<compile_context>
chip_gen: v7x
topology: tpu7x:2x2x1
jax: 0.10.0
libtpu: 0.0.40
codegen_flags: <defaults>
</compile_context>

<pallas_src>
import functools

import jax
import jax.numpy as jnp
from jax.experimental import pallas as pl
from jax.experimental.pallas import tpu as pltpu


# ----------------------------------------------------------------------------
# Fused kernel: one grid step = one batch sample, layout (H, D*W*C), lane order [d, w, c].
# ----------------------------------------------------------------------------
def _bottleneck_kernel(x_ref, w1_ref, b1_ref, w2_ref, b2_ref, w3_ref, b3_ref,
                       weca_ref, o_ref, *, H, D, W, C, inv_count):
    DWC = D * W * C
    x2 = x_ref[0].astype(jnp.float32)                                   # (H, D*W*Cin)

    # ---- conv1 (1x1x1) + bn1 + relu: one block-diagonal lane-dense matmul ----
    o1 = jnp.dot(x2, w1_ref[...], preferred_element_type=jnp.float32) + b1_ref[...]
    o1 = jnp.maximum(o1, 0.0)                                           # (H, D*W*P)

    # ---- conv2 (3x3x3) + bn2 + relu: kd/kw taps (+ D/W zero pad) folded into banded weights,
    #      kh handled by a sublane roll + boundary mask -> 3 lane-dense matmuls ----
    row = jax.lax.broadcasted_iota(jnp.int32, o1.shape, 0)
    acc = jnp.dot(o1, w2_ref[1], preferred_element_type=jnp.float32)             # kh = 1
    o1_up = jnp.where(row >= 1, pltpu.roll(o1, shift=1, axis=0), 0.0)             # o1[h-1]
    acc = acc + jnp.dot(o1_up, w2_ref[0], preferred_element_type=jnp.float32)     # kh = 0
    o1_dn = jnp.where(row <= H - 2, pltpu.roll(o1, shift=H - 1, axis=0), 0.0)     # o1[h+1]
    acc = acc + jnp.dot(o1_dn, w2_ref[2], preferred_element_type=jnp.float32)     # kh = 2
    o2 = jnp.maximum(acc + b2_ref[...], 0.0)                            # (H, D*W*P)

    # ---- conv3 (1x1x1) + bn3: block-diagonal lane-dense matmul ----
    o3 = jnp.dot(o2, w3_ref[...], preferred_element_type=jnp.float32) + b3_ref[...]  # (H, DWC)

    # ---- ECA: global average pool per channel (sublane reduce + log2(D*W) doubling rolls) ----
    col = jnp.sum(o3, axis=0, keepdims=True)                            # (1, DWC), summed over h
    G = D * W
    if (G & (G - 1)) == 0:
        step = C
        while step < DWC:
            col = col + pltpu.roll(col, shift=step, axis=1)
            step *= 2
    else:  # generic fallback for non power-of-two D*W
        total = col
        for g in range(1, G):
            total = total + pltpu.roll(col, shift=g * C, axis=1)
        col = total
    y = col * inv_count              # every lane now holds the mean of its own channel (lane % C)

    # ---- 3-tap channel conv (zero padded) + sigmoid gate, evaluated per lane (no replication) ----
    lane_c = jax.lax.broadcasted_iota(jnp.int32, (1, DWC), 1) % C
    y_m1 = jnp.where(lane_c >= 1, pltpu.roll(y, shift=1, axis=1), 0.0)            # y[c-1]
    y_p1 = jnp.where(lane_c <= C - 2, pltpu.roll(y, shift=DWC - 1, axis=1), 0.0)  # y[c+1]
    wb = weca_ref[...]                                                   # (3, DWC) broadcast taps
    gate = jax.nn.sigmoid(wb[0:1, :] * y_m1 + wb[1:2, :] * y + wb[2:3, :] * y_p1)

    # ---- gate * out + residual (x already resident in VMEM), relu ----
    o_ref[0] = jnp.maximum(o3 * gate + x2, 0.0).astype(o_ref.dtype)


# ----------------------------------------------------------------------------
# Parameter folding: BN scale/shift folded into conv weights; conv weights rewritten as
# block-diagonal / banded matrices for the D/W-folded lane layout (lane order [d, w, c]).
# ----------------------------------------------------------------------------
def fold_params(params, D, W):
    w1, w2, w3 = params["w1"], params["w2"], params["w3"]
    cin, p = w1.shape
    cout = w3.shape[1]
    G = D * W
    eye_g = jnp.eye(G, dtype=jnp.float32)

    # conv1 * bn1-scale -> block diagonal over the D*W lane groups
    w1f = w1 * params["s1"][None, :]
    w1b = jnp.einsum("uv,cp->ucvp", eye_g, w1f).reshape(G * cin, G * p)
    b1f = jnp.tile(params["b1"], G).reshape(1, G * p)

    # conv2 * bn2-scale -> one banded (D*W*P, D*W*P) weight per kh; the band folds the kd and kw
    # taps and their D / W zero padding.
    w2f = w2 * params["s2"][None, None, None, None, :]                  # (kd, kh, kw, ci, co)
    dd = jnp.arange(D)[:, None] - jnp.arange(D)[None, :]                # d_in - d_out
    dw = jnp.arange(W)[:, None] - jnp.arange(W)[None, :]                # w_in - w_out
    sel_d = jnp.clip(dd + 1, 0, 2)
    sel_w = jnp.clip(dw + 1, 0, 2)
    mask = ((jnp.abs(dd) <= 1).astype(jnp.float32)[:, :, None, None] *
            (jnp.abs(dw) <= 1).astype(jnp.float32)[None, None, :, :])   # (D, D, W, W)
    bands = []
    for kh in range(3):
        w2_kh = w2f[:, kh]                                              # (kd, kw, ci, co)
        band = w2_kh[sel_d[:, :, None, None], sel_w[None, None, :, :]]  # (D, D, W, W, P, P)
        band = band * mask[..., None, None]
        band = jnp.transpose(band, (0, 2, 4, 1, 3, 5)).reshape(G * p, G * p)
        bands.append(band)
    w2b = jnp.stack(bands, axis=0)                                      # (3, D*W*P, D*W*P)
    b2f = jnp.tile(params["b2"], G).reshape(1, G * p)

    # conv3 * bn3-scale -> block diagonal
    w3f = w3 * params["s3"][None, :]
    w3b = jnp.einsum("uv,po->upvo", eye_g, w3f).reshape(G * p, G * cout)
    b3f = jnp.tile(params["b3"], G).reshape(1, G * cout)

    weca = jnp.broadcast_to(params["w_eca"][:, None], (3, G * cout)).astype(jnp.float32)
    return dict(w1b=w1b, b1=b1f, w2b=w2b, b2=b2f, w3b=w3b, b3=b3f, weca=weca)


# ----------------------------------------------------------------------------
# Full Bottleneck forward (stride=1, downsample=None, head_conv=1, k_size=3)
# ----------------------------------------------------------------------------
def bottleneck_forward(x, params):
    N, D, H, W, Cin = x.shape
    Cout = params["w3"].shape[1]
    assert Cin == Cout, "residual path (downsample=None) requires in_planes == planes*4"
    assert H >= 2, "kh sublane-roll masking assumes H >= 2"

    k = fold_params(params, D, W)

    # Layout plumbing (outside the kernel): fold (D, W, C) into one lane-dense axis, H on sublanes.
    xt = jnp.transpose(x, (0, 2, 1, 3, 4)).reshape(N, H, D * W * Cin)

    def full_spec(shape):
        return pl.BlockSpec(shape, lambda n, _s=len(shape): (0,) * _s)

    out = pl.pallas_call(
        functools.partial(_bottleneck_kernel, H=H, D=D, W=W, C=Cout,
                          inv_count=1.0 / float(D * H * W)),
        out_shape=jax.ShapeDtypeStruct((N, H, D * W * Cout), x.dtype),
        grid=(N,),
        in_specs=[
            pl.BlockSpec((1, H, D * W * Cin), lambda n: (n, 0, 0)),
            # Weight/bias operands: constant index_map -> DMA'd once, resident across grid steps.
            full_spec(k["w1b"].shape), full_spec(k["b1"].shape),
            full_spec(k["w2b"].shape), full_spec(k["b2"].shape),
            full_spec(k["w3b"].shape), full_spec(k["b3"].shape),
            full_spec(k["weca"].shape),
        ],
        out_specs=pl.BlockSpec((1, H, D * W * Cout), lambda n: (n, 0, 0)),
        compiler_params=pltpu.CompilerParams(dimension_semantics=("parallel",)),
    )(xt, k["w1b"], k["b1"], k["w2b"], k["b2"], k["w3b"], k["b3"], k["weca"])

    return jnp.transpose(out.reshape(N, H, D, W, Cout), (0, 2, 1, 3, 4))


# ----------------------------------------------------------------------------
# Deterministic synthetic parameters (eval-mode BN folded to per-channel scale/shift)
# ----------------------------------------------------------------------------
def make_params(key, in_planes, planes, k_size=3, eps=1e-5):
    expansion = 4
    cout = planes * expansion
    keys = jax.random.split(key, 16)

    def bn_fold(kg, kb, km, kv, c):
        gamma = 1.0 + 0.1 * jax.random.normal(kg, (c,), jnp.float32)
        beta = 0.1 * jax.random.normal(kb, (c,), jnp.float32)
        mean = 0.1 * jax.random.normal(km, (c,), jnp.float32)
        var = 1.0 + 0.1 * jax.random.uniform(kv, (c,), jnp.float32)
        scale = gamma / jnp.sqrt(var + eps)
        shift = beta - mean * scale
        return scale, shift

    w1 = 0.1 * jax.random.normal(keys[0], (in_planes, planes), jnp.float32)
    s1, b1 = bn_fold(keys[1], keys[2], keys[3], keys[4], planes)
    w2 = 0.1 * jax.random.normal(keys[5], (3, 3, 3, planes, planes), jnp.float32)
    s2, b2 = bn_fold(keys[6], keys[7], keys[8], keys[9], planes)
    w3 = 0.1 * jax.random.normal(keys[10], (planes, cout), jnp.float32)
    s3, b3 = bn_fold(keys[11], keys[12], keys[13], keys[14], cout)
    w_eca = 0.5 * jax.random.normal(keys[15], (k_size,), jnp.float32)

    return dict(w1=w1, s1=s1, b1=b1, w2=w2, s2=s2, b2=b2,
                w3=w3, s3=s3, b3=b3, w_eca=w_eca)


# ----------------------------------------------------------------------------
# Pure-JAX reference (for correctness check only)
# ----------------------------------------------------------------------------
def reference_forward(x, params):
    out = jnp.einsum("ndhwc,co->ndhwo", x, params["w1"])
    out = jnp.maximum(out * params["s1"] + params["b1"], 0.0)
    out = jax.lax.conv_general_dilated(
        out, params["w2"], window_strides=(1, 1, 1),
        padding=((1, 1), (1, 1), (1, 1)),
        dimension_numbers=("NDHWC", "DHWIO", "NDHWC"))
    out = jnp.maximum(out * params["s2"] + params["b2"], 0.0)
    out = jnp.einsum("ndhwc,co->ndhwo", out, params["w3"])
    out = out * params["s3"] + params["b3"]
    C = out.shape[-1]
    # ECA
    y = jnp.mean(out, axis=(1, 2, 3))                       # (N, C)
    w = params["w_eca"]
    yp = jnp.pad(y, ((0, 0), (1, 1)))
    y2 = w[0] * yp[:, :C] + w[1] * yp[:, 1:C + 1] + w[2] * yp[:, 2:]
    s = jax.nn.sigmoid(y2)
    out = out * s[:, None, None, None, :]
    out = out + x
    return jnp.maximum(out, 0.0)


if __name__ == "__main__":
    key = jax.random.PRNGKey(0)
    kx, kp = jax.random.split(key)

    # Shapes consistent with Bottleneck(in_planes=16, planes=4): residual add
    # requires in_planes == planes * expansion = 16.  NDHWC here == NCDHW (2,16,4,8,8).
    N, D, H, W = 2, 4, 8, 8
    in_planes, planes = 16, 4

    x = jax.random.normal(kx, (N, D, H, W, in_planes), jnp.float32)
    params = make_params(kp, in_planes, planes)

    out = jax.jit(bottleneck_forward)(x, params)
    out = jax.block_until_ready(out)

    assert out.shape == (N, D, H, W, planes * 4)
    ref = reference_forward(x, params)
    err = float(jnp.max(jnp.abs(out - ref)))
    if err > 2e-3:
        raise AssertionError(f"mismatch vs reference: max abs err = {err}")
    print("KERNEL_OK")
</pallas_src>

<mosaic_0001>
module attributes {stable_mosaic.version = 11 : i64} {
  func.func @_bottleneck_kernel(%arg0: i32, %arg1: memref<1x8x512xf32, #tpu.memory_space<vmem>>, %arg2: memref<512x128xf32, #tpu.memory_space<vmem>>, %arg3: memref<1x128xf32, #tpu.memory_space<vmem>>, %arg4: memref<3x128x128xf32, #tpu.memory_space<vmem>>, %arg5: memref<1x128xf32, #tpu.memory_space<vmem>>, %arg6: memref<128x512xf32, #tpu.memory_space<vmem>>, %arg7: memref<1x512xf32, #tpu.memory_space<vmem>>, %arg8: memref<3x512xf32, #tpu.memory_space<vmem>>, %arg9: memref<1x8x512xf32, #tpu.memory_space<vmem>>) attributes {dimension_semantics = [#tpu.dimension_semantics<parallel>], iteration_bounds = array<i64: 2>, scalar_prefetch = 0 : i64, scratch_operands = 0 : i64, tpu.core_type = #tpu.core_type<tc>, window_params = [{transform_indices = @transform_0, window_bounds = array<i64: 1, 8, 512>}, {pipeline_mode = #tpu.pipeline_mode<synchronous>, transform_indices = @transform_1, window_bounds = array<i64: 512, 128>}, {pipeline_mode = #tpu.pipeline_mode<synchronous>, transform_indices = @transform_2, window_bounds = array<i64: 1, 128>}, {pipeline_mode = #tpu.pipeline_mode<synchronous>, transform_indices = @transform_3, window_bounds = array<i64: 3, 128, 128>}, {pipeline_mode = #tpu.pipeline_mode<synchronous>, transform_indices = @transform_4, window_bounds = array<i64: 1, 128>}, {pipeline_mode = #tpu.pipeline_mode<synchronous>, transform_indices = @transform_5, window_bounds = array<i64: 128, 512>}, {pipeline_mode = #tpu.pipeline_mode<synchronous>, transform_indices = @transform_6, window_bounds = array<i64: 1, 512>}, {pipeline_mode = #tpu.pipeline_mode<synchronous>, transform_indices = @transform_7, window_bounds = array<i64: 3, 512>}, {transform_indices = @transform_8, window_bounds = array<i64: 1, 8, 512>}]} {
    %c0 = arith.constant 0 : index
    %c0_0 = arith.constant 0 : index
    %c0_1 = arith.constant 0 : index
    %0 = vector.load %arg1[%c0, %c0_0, %c0_1] : memref<1x8x512xf32, #tpu.memory_space<vmem>>, vector<1x8x512xf32>
    %1 = vector.shape_cast %0 : vector<1x8x512xf32> to vector<8x512xf32>
    %c0_2 = arith.constant 0 : index
    %c0_3 = arith.constant 0 : index
    %2 = vector.load %arg2[%c0_2, %c0_3] : memref<512x128xf32, #tpu.memory_space<vmem>>, vector<512x128xf32>
    %cst = arith.constant dense<0.000000e+00> : vector<8x128xf32>
    %3 = tpu.matmul %1, %2, %cst {dimension_numbers = #tpu.dot_dimension_numbers<[1], [0], [0], [1], [0, 0, 1, 1], [], []>} : vector<8x512xf32>, vector<512x128xf32>, vector<8x128xf32> -> vector<8x128xf32>
    %c0_4 = arith.constant 0 : index
    %c0_5 = arith.constant 0 : index
    %4 = vector.load %arg3[%c0_4, %c0_5] : memref<1x128xf32, #tpu.memory_space<vmem>>, vector<1x128xf32>
    %5 = vector.broadcast %4 : vector<1x128xf32> to vector<8x128xf32>
    %6 = arith.addf %3, %5 : vector<8x128xf32>
    %cst_6 = arith.constant 0.000000e+00 : f32
    %7 = vector.broadcast %cst_6 : f32 to vector<8x128xf32>
    %8 = arith.maximumf %6, %7 : vector<8x128xf32>
    %9 = tpu.iota {dimensions = array<i32: 0>} : vector<8x128xi32>
    %c1 = arith.constant 1 : index
    %c0_7 = arith.constant 0 : index
    %c0_8 = arith.constant 0 : index
    %10 = vector.load %arg4[%c1, %c0_7, %c0_8] : memref<3x128x128xf32, #tpu.memory_space<vmem>>, vector<1x128x128xf32>
    %11 = vector.shape_cast %10 : vector<1x128x128xf32> to vector<128x128xf32>
    %cst_9 = arith.constant dense<0.000000e+00> : vector<8x128xf32>
    %12 = tpu.matmul %8, %11, %cst_9 {dimension_numbers = #tpu.dot_dimension_numbers<[1], [0], [0], [1], [0, 0, 1, 1], [], []>} : vector<8x128xf32>, vector<128x128xf32>, vector<8x128xf32> -> vector<8x128xf32>
    %c1_i32 = arith.constant 1 : i32
    %13 = vector.broadcast %c1_i32 : i32 to vector<8x128xi32>
    %14 = arith.cmpi sge, %9, %13 : vector<8x128xi32>
    %c1_i32_10 = arith.constant 1 : i32
    %15 = tpu.dynamic_rotate %8 by %c1_i32_10 dim 0 : vector<8x128xf32>, i32 -> vector<8x128xf32>
    %cst_11 = arith.constant 0.000000e+00 : f32
    %16 = vector.broadcast %cst_11 : f32 to vector<8x128xf32>
    %17 = arith.select %14, %15, %16 : vector<8x128xi1>, vector<8x128xf32>
    %c0_12 = arith.constant 0 : index
    %c0_13 = arith.constant 0 : index
    %c0_14 = arith.constant 0 : index
    %18 = vector.load %arg4[%c0_12, %c0_13, %c0_14] : memref<3x128x128xf32, #tpu.memory_space<vmem>>, vector<1x128x128xf32>
    %19 = vector.shape_cast %18 : vector<1x128x128xf32> to vector<128x128xf32>
    %cst_15 = arith.constant dense<0.000000e+00> : vector<8x128xf32>
    %20 = tpu.matmul %17, %19, %cst_15 {dimension_numbers = #tpu.dot_dimension_numbers<[1], [0], [0], [1], [0, 0, 1, 1], [], []>} : vector<8x128xf32>, vector<128x128xf32>, vector<8x128xf32> -> vector<8x128xf32>
    %21 = arith.addf %12, %20 : vector<8x128xf32>
    %c6_i32 = arith.constant 6 : i32
    %22 = vector.broadcast %c6_i32 : i32 to vector<8x128xi32>
    %23 = arith.cmpi sle, %9, %22 : vector<8x128xi32>
    %c7_i32 = arith.constant 7 : i32
    %24 = tpu.dynamic_rotate %8 by %c7_i32 dim 0 : vector<8x128xf32>, i32 -> vector<8x128xf32>
    %cst_16 = arith.constant 0.000000e+00 : f32
    %25 = vector.broadcast %cst_16 : f32 to vector<8x128xf32>
    %26 = arith.select %23, %24, %25 : vector<8x128xi1>, vector<8x128xf32>
    %c2 = arith.constant 2 : index
    %c0_17 = arith.constant 0 : index
    %c0_18 = arith.constant 0 : index
    %27 = vector.load %arg4[%c2, %c0_17, %c0_18] : memref<3x128x128xf32, #tpu.memory_space<vmem>>, vector<1x128x128xf32>
    %28 = vector.shape_cast %27 : vector<1x128x128xf32> to vector<128x128xf32>
    %cst_19 = arith.constant dense<0.000000e+00> : vector<8x128xf32>
    %29 = tpu.matmul %26, %28, %cst_19 {dimension_numbers = #tpu.dot_dimension_numbers<[1], [0], [0], [1], [0, 0, 1, 1], [], []>} : vector<8x128xf32>, vector<128x128xf32>, vector<8x128xf32> -> vector<8x128xf32>
    %30 = arith.addf %21, %29 : vector<8x128xf32>
    %c0_20 = arith.constant 0 : index
    %c0_21 = arith.constant 0 : index
    %31 = vector.load %arg5[%c0_20, %c0_21] : memref<1x128xf32, #tpu.memory_space<vmem>>, vector<1x128xf32>
    %32 = vector.broadcast %31 : vector<1x128xf32> to vector<8x128xf32>
    %33 = arith.addf %30, %32 : vector<8x128xf32>
    %cst_22 = arith.constant 0.000000e+00 : f32
    %34 = vector.broadcast %cst_22 : f32 to vector<8x128xf32>
    %35 = arith.maximumf %33, %34 : vector<8x128xf32>
    %c0_23 = arith.constant 0 : index
    %c0_24 = arith.constant 0 : index
    %36 = vector.load %arg6[%c0_23, %c0_24] : memref<128x512xf32, #tpu.memory_space<vmem>>, vector<128x512xf32>
    %cst_25 = arith.constant dense<0.000000e+00> : vector<8x512xf32>
    %37 = tpu.matmul %35, %36, %cst_25 {dimension_numbers = #tpu.dot_dimension_numbers<[1], [0], [0], [1], [0, 0, 1, 1], [], []>} : vector<8x128xf32>, vector<128x512xf32>, vector<8x512xf32> -> vector<8x512xf32>
    %c0_26 = arith.constant 0 : index
    %c0_27 = arith.constant 0 : index
    %38 = vector.load %arg7[%c0_26, %c0_27] : memref<1x512xf32, #tpu.memory_space<vmem>>, vector<1x512xf32>
    %39 = vector.broadcast %38 : vector<1x512xf32> to vector<8x512xf32>
    %40 = arith.addf %37, %39 : vector<8x512xf32>
    %cst_28 = arith.constant dense<0.000000e+00> : vector<512xf32>
    %41 = vector.multi_reduction <add>, %40, %cst_28 [0] : vector<8x512xf32> to vector<512xf32>
    %42 = vector.shape_cast %41 : vector<512xf32> to vector<1x512xf32>
    %c16_i32 = arith.constant 16 : i32
    %43 = tpu.dynamic_rotate %42 by %c16_i32 dim 1 : vector<1x512xf32>, i32 -> vector<1x512xf32>
    %44 = arith.addf %42, %43 : vector<1x512xf32>
    %c32_i32 = arith.constant 32 : i32
    %45 = tpu.dynamic_rotate %44 by %c32_i32 dim 1 : vector<1x512xf32>, i32 -> vector<1x512xf32>
    %46 = arith.addf %44, %45 : vector<1x512xf32>
    %c64_i32 = arith.constant 64 : i32
    %47 = tpu.dynamic_rotate %46 by %c64_i32 dim 1 : vector<1x512xf32>, i32 -> vector<1x512xf32>
    %48 = arith.addf %46, %47 : vector<1x512xf32>
    %c128_i32 = arith.constant 128 : i32
    %49 = tpu.dynamic_rotate %48 by %c128_i32 dim 1 : vector<1x512xf32>, i32 -> vector<1x512xf32>
    %50 = arith.addf %48, %49 : vector<1x512xf32>
    %c256_i32 = arith.constant 256 : i32
    %51 = tpu.dynamic_rotate %50 by %c256_i32 dim 1 : vector<1x512xf32>, i32 -> vector<1x512xf32>
    %52 = arith.addf %50, %51 : vector<1x512xf32>
    %cst_29 = arith.constant 3.906250e-03 : f32
    %53 = vector.broadcast %cst_29 : f32 to vector<1x512xf32>
    %54 = arith.mulf %52, %53 : vector<1x512xf32>
    %55 = tpu.iota {dimensions = array<i32: 1>} : vector<1x512xi32>
    %c16_i32_30 = arith.constant 16 : i32
    %c0_i32 = arith.constant 0 : i32
    %56 = arith.cmpi eq, %c16_i32_30, %c0_i32 : i32
    %c1_i32_31 = arith.constant 1 : i32
    %57 = arith.select %56, %c1_i32_31, %c16_i32_30 : i32
    %58 = vector.broadcast %57 : i32 to vector<1x512xi32>
    %59 = arith.remsi %55, %58 : vector<1x512xi32>
    %c0_i32_32 = arith.constant 0 : i32
    %60 = vector.broadcast %c0_i32_32 : i32 to vector<1x512xi32>
    %61 = arith.cmpi ne, %59, %60 : vector<1x512xi32>
    %c0_i32_33 = arith.constant 0 : i32
    %62 = vector.broadcast %c0_i32_33 : i32 to vector<1x512xi32>
    %63 = arith.cmpi slt, %59, %62 : vector<1x512xi32>
    %c0_i32_34 = arith.constant 0 : i32
    %64 = arith.cmpi slt, %57, %c0_i32_34 : i32
    %65 = vector.broadcast %64 : i1 to vector<1x512xi1>
    %66 = vector.broadcast %65 : vector<1x512xi1> to vector<1x512xi1>
    %67 = arith.xori %63, %66 : vector<1x512xi1>
    %68 = arith.andi %67, %61 : vector<1x512xi1>
    %69 = vector.broadcast %57 : i32 to vector<1x512xi32>
    %70 = arith.addi %59, %69 : vector<1x512xi32>
    %71 = arith.select %68, %70, %59 : vector<1x512xi1>, vector<1x512xi32>
    %c1_i32_35 = arith.constant 1 : i32
    %72 = vector.broadcast %c1_i32_35 : i32 to vector<1x512xi32>
    %73 = arith.cmpi sge, %71, %72 : vector<1x512xi32>
    %c1_i32_36 = arith.constant 1 : i32
    %74 = tpu.dynamic_rotate %54 by %c1_i32_36 dim 1 : vector<1x512xf32>, i32 -> vector<1x512xf32>
    %cst_37 = arith.constant 0.000000e+00 : f32
    %75 = vector.broadcast %cst_37 : f32 to vector<1x512xf32>
    %76 = arith.select %73, %74, %75 : vector<1x512xi1>, vector<1x512xf32>
    %c14_i32 = arith.constant 14 : i32
    %77 = vector.broadcast %c14_i32 : i32 to vector<1x512xi32>
    %78 = arith.cmpi sle, %71, %77 : vector<1x512xi32>
    %c511_i32 = arith.constant 511 : i32
    %79 = tpu.dynamic_rotate %54 by %c511_i32 dim 1 : vector<1x512xf32>, i32 -> vector<1x512xf32>
    %cst_38 = arith.constant 0.000000e+00 : f32
    %80 = vector.broadcast %cst_38 : f32 to vector<1x512xf32>
    %81 = arith.select %78, %79, %80 : vector<1x512xi1>, vector<1x512xf32>
    %c0_39 = arith.constant 0 : index
    %c0_40 = arith.constant 0 : index
    %82 = vector.load %arg8[%c0_39, %c0_40] : memref<3x512xf32, #tpu.memory_space<vmem>>, vector<3x512xf32>
    %83 = vector.extract_strided_slice %82 {offsets = [0, 0], sizes = [1, 512], strides = [1, 1]} : vector<3x512xf32> to vector<1x512xf32>
    %84 = arith.mulf %83, %76 : vector<1x512xf32>
    %85 = vector.extract_strided_slice %82 {offsets = [1, 0], sizes = [1, 512], strides = [1, 1]} : vector<3x512xf32> to vector<1x512xf32>
    %86 = arith.mulf %85, %54 : vector<1x512xf32>
    %87 = arith.addf %84, %86 : vector<1x512xf32>
    %88 = vector.extract_strided_slice %82 {offsets = [2, 0], sizes = [1, 512], strides = [1, 1]} : vector<3x512xf32> to vector<1x512xf32>
    %89 = arith.mulf %88, %81 : vector<1x512xf32>
    %90 = arith.addf %87, %89 : vector<1x512xf32>
    %91 = arith.negf %90 : vector<1x512xf32>
    %92 = math.exp %91 : vector<1x512xf32>
    %cst_41 = arith.constant 1.000000e+00 : f32
    %93 = vector.broadcast %cst_41 : f32 to vector<1x512xf32>
    %94 = arith.addf %93, %92 : vector<1x512xf32>
    %95 = arith.divf %93, %94 : vector<1x512xf32>
    %96 = vector.broadcast %95 : vector<1x512xf32> to vector<8x512xf32>
    %97 = arith.mulf %40, %96 : vector<8x512xf32>
    %98 = arith.addf %97, %1 : vector<8x512xf32>
    %cst_42 = arith.constant 0.000000e+00 : f32
    %99 = vector.broadcast %cst_42 : f32 to vector<8x512xf32>
    %100 = arith.maximumf %98, %99 : vector<8x512xf32>
    %c0_43 = arith.constant 0 : index
    %c0_44 = arith.constant 0 : index
    %c0_45 = arith.constant 0 : index
    %101 = vector.load %arg9[%c0_43, %c0_44, %c0_45] : memref<1x8x512xf32, #tpu.memory_space<vmem>>, vector<1x8x512xf32>
    %102 = vector.shape_cast %101 : vector<1x8x512xf32> to vector<8x512xf32>
    %103 = vector.shape_cast %100 : vector<8x512xf32> to vector<1x8x512xf32>
    tpu.vector_store %arg9[%c0_43, %c0_44, %c0_45], %103 {strides = array<i32>} : memref<1x8x512xf32, #tpu.memory_space<vmem>>, vector<1x8x512xf32>,
    return
  }
  func.func @transform_0(%arg0: i32) -> (i32, i32, i32) {
    %c0_i32 = arith.constant 0 : i32
    %c0_i32_0 = arith.constant 0 : i32
    %c0_i32_1 = arith.constant 0 : i32
    return %arg0, %c0_i32, %c0_i32_0 : i32, i32, i32
  }
  func.func @transform_1(%arg0: i32) -> (i32, i32) {
    %c0_i32 = arith.constant 0 : i32
    %c0_i32_0 = arith.constant 0 : i32
    %c0_i32_1 = arith.constant 0 : i32
    return %c0_i32, %c0_i32_0 : i32, i32
  }
  func.func @transform_2(%arg0: i32) -> (i32, i32) {
    %c0_i32 = arith.constant 0 : i32
    %c0_i32_0 = arith.constant 0 : i32
    %c0_i32_1 = arith.constant 0 : i32
    return %c0_i32, %c0_i32_0 : i32, i32
  }
  func.func @transform_3(%arg0: i32) -> (i32, i32, i32) {
    %c0_i32 = arith.constant 0 : i32
    %c0_i32_0 = arith.constant 0 : i32
    %c0_i32_1 = arith.constant 0 : i32
    %c0_i32_2 = arith.constant 0 : i32
    return %c0_i32, %c0_i32_0, %c0_i32_1 : i32, i32, i32
  }
  func.func @transform_4(%arg0: i32) -> (i32, i32) {
    %c0_i32 = arith.constant 0 : i32
    %c0_i32_0 = arith.constant 0 : i32
    %c0_i32_1 = arith.constant 0 : i32
    return %c0_i32, %c0_i32_0 : i32, i32
  }
  func.func @transform_5(%arg0: i32) -> (i32, i32) {
    %c0_i32 = arith.constant 0 : i32
    %c0_i32_0 = arith.constant 0 : i32
    %c0_i32_1 = arith.constant 0 : i32
    return %c0_i32, %c0_i32_0 : i32, i32
  }
  func.func @transform_6(%arg0: i32) -> (i32, i32) {
    %c0_i32 = arith.constant 0 : i32
    %c0_i32_0 = arith.constant 0 : i32
    %c0_i32_1 = arith.constant 0 : i32
    return %c0_i32, %c0_i32_0 : i32, i32
  }
  func.func @transform_7(%arg0: i32) -> (i32, i32) {
    %c0_i32 = arith.constant 0 : i32
    %c0_i32_0 = arith.constant 0 : i32
    %c0_i32_1 = arith.constant 0 : i32
    return %c0_i32, %c0_i32_0 : i32, i32
  }
  func.func @transform_8(%arg0: i32) -> (i32, i32, i32) {
    %c0_i32 = arith.constant 0 : i32
    %c0_i32_0 = arith.constant 0 : i32
    %c0_i32_1 = arith.constant 0 : i32
    return %arg0, %c0_i32, %c0_i32_0 : i32, i32, i32
  }
}

</mosaic_0001>

<bundles_post_ra>
// kernel: tile.28
= control target key start
LH: loop header
LB: loop body
LE: loop exit
PB: predicated region body
PF: predicated region fallthrough
CT: control target
= control target key end

     0   :  { %s40_s0 = inlined_call_operand.vmem [shape: f32[16], index: 0, kind: input, shape index: {}]   ;;  %s41_s1 = inlined_call_operand.vmem [shape: f32[32,16], index: 1, kind: output, shape index: {}]  }
   0x1   :  { %v4_v0 = vld [vmem:[%s40_s0] ss:$0 sm:$0xff] }
   0x2   :  { %5 = vst [vmem:[%s41_s1] sm:$0xff] %v4_v0  ;;  %12 = vst [vmem:[%s41_s1 + $0x8] sm:$0xff] %v4_v0 }
   0x3   :  { %13 = vst [vmem:[%s41_s1 + $0x10] sm:$0xff] %v4_v0  ;;  %14 = vst [vmem:[%s41_s1 + $0x18] sm:$0xff] %v4_v0 }

// kernel: tile.29
= control target key start
LH: loop header
LB: loop body
LE: loop exit
PB: predicated region body
PF: predicated region fallthrough
CT: control target
= control target key end

     0   :  { %s89_s8 = smov 112   ;;  %s90_s11 = smov 80   ;;  %vm3_vm0 = vcmask 130048   ;;  %vm9_vm1 = vcmask 1048448   ;;  %vm15_vm2 = vcmask 917248   ;;  %vm21_vm3 = vcmask 786048   ;;  %s142_s0 = inlined_call_operand.vmem [shape: f32[32,16], index: 0, kind: input, shape index: {}]   ;;  %s143_s1 = inlined_call_operand.vmem [shape: f32[1,512], index: 1, kind: output, shape index: {}]  }
   0x1   :  { %v72_v0 = vld [vmem:[%s142_s0 + $0x7] ss:$8 sm:$0xf]   ;;  %v74_v1 = vld [vmem:[%s142_s0 + $0x5] ss:$8 sm:$0xf]  }
   0x2   :  { %7 = vrot.lane.b32.xlu0 %v72_v0, %s89_s8  ;;  %19 = vrot.lane.b32.xlu1 %v74_v1, %s90_s11  ;;  %v73_v2 = vld [vmem:[%s142_s0 + $0x6] ss:$8 sm:$0xf]   ;;  %v75_v3 = vld [vmem:[%s142_s0 + $0x4] ss:$8 sm:$0xf]  }
   0x3   :  { %s91_s16 = smov 96   ;;  %v2_v4 = vld [vmem:[%s142_s0] ss:$8 sm:$0xf]   ;;  %s92_s19 = smov 64   ;;  %vm27_vm4 = vcmask 654848  }
   0x4   :  { %v76_v5 = vld [vmem:[%s142_s0 + $0x3] ss:$8 sm:$0xf]   ;;  %4 = vst.msk [vmem:[#allocation0] ss:$8 sm:$0xf] %vm3_vm0, %v2_v4  }
   0x5   :  { %v77_v6 = vld [vmem:[%s142_s0 + $0x2] ss:$8 sm:$0xf]   ;;  %s93_s24 = smov 48   ;;  %s94_s25 = smov 32   ;;  %vm33_vm5 = vcmask 523648  }
   0x6   :  { %13 = vrot.lane.b32.xlu0 %v73_v2, %s91_s16  ;;  %25 = vrot.lane.b32.xlu1 %v75_v3, %s92_s19  ;;  %v78_v7 = vld [vmem:[%s142_s0 + $0x1] ss:$8 sm:$0xf]   ;;  %s95_s0 = smov 16   ;;  %vm39_vm6 = vcmask 392448   ;;  %vm45_vm7 = vcmask 261248  }
   0xa   :  { %31 = vrot.lane.b32.xlu0 %v76_v5, %s93_s24  ;;  %37 = vrot.lane.b32.xlu1 %v77_v6, %s94_s25 }
   0xe   :  { %43 = vrot.lane.b32.xlu0 %v78_v7, %s95_s0 }
  0x74   :  { %v8_v8 = vpop.permute.xlu0 %7   ;;  %v20_v9 = vpop.permute.xlu1 %19  }
  0x75   :  { %10 = vst.msk [vmem:[#allocation0] ss:$8 sm:$0xf] %vm9_vm1, %v8_v8  }
  0x78   :  { %v14_v10 = vpop.permute.xlu0 %13   ;;  %v26_v11 = vpop.permute.xlu1 %25  }
  0x79   :  { %16 = vst.msk [vmem:[#allocation0] ss:$8 sm:$0xf] %vm15_vm2, %v14_v10  }
  0x7a   :  { %22 = vst.msk [vmem:[#allocation0] ss:$8 sm:$0xf] %vm21_vm3, %v20_v9  }
  0x7b   :  { %28 = vst.msk [vmem:[#allocation0] ss:$8 sm:$0xf] %vm27_vm4, %v26_v11  }
  0x7c   :  { %v32_v12 = vpop.permute.xlu0 %31   ;;  %v38_v13 = vpop.permute.xlu1 %37  }
  0x7d   :  { %34 = vst.msk [vmem:[#allocation0] ss:$8 sm:$0xf] %vm33_vm5, %v32_v12  }
  0x7e   :  { %40 = vst.msk [vmem:[#allocation0] ss:$8 sm:$0xf] %vm39_vm6, %v38_v13  }
  0x80   :  { %v44_v14 = vpop.permute.xlu0 %43  }
  0x81   :  { %46 = vst.msk [vmem:[#allocation0] ss:$8 sm:$0xf] %vm45_vm7, %v44_v14  }
  0x88   :  { %v50_v15 = vld [vmem:[#allocation0] sm:$0x1]  ;;  %v54_v16 = vld [vmem:[#allocation0 + $0x8] sm:$0x1]  ;;  %v59_v17 = vld [vmem:[#allocation0 + $0x10] sm:$0x1] }
  0x89   :  { %52 = vst [vmem:[%s143_s1] sm:$0x1] %v50_v15  ;;  %79 = vst [vmem:[%s143_s1 + $0x1] sm:$0x1] %v54_v16  ;;  %v65_v18 = vld [vmem:[#allocation0 + $0x18] sm:$0x1] }
  0x8a   :  { %80 = vst [vmem:[%s143_s1 + $0x2] sm:$0x1] %v59_v17  ;;  %81 = vst [vmem:[%s143_s1 + $0x3] sm:$0x1] %v65_v18 }

// kernel: tile.18
= control target key start
LH: loop header
LB: loop body
LE: loop exit
PB: predicated region body
PF: predicated region fallthrough
CT: control target
= control target key end

     0   :  { %s40_s0 = inlined_call_operand.vmem [shape: f32[4], index: 0, kind: input, shape index: {}]   ;;  %s41_s1 = inlined_call_operand.vmem [shape: f32[32,4], index: 1, kind: output, shape index: {}]  }
   0x1   :  { %v4_v0 = vld [vmem:[%s40_s0] ss:$0 sm:$0xff] }
   0x2   :  { %5 = vst [vmem:[%s41_s1] sm:$0xff] %v4_v0  ;;  %12 = vst [vmem:[%s41_s1 + $0x8] sm:$0xff] %v4_v0 }
   0x3   :  { %13 = vst [vmem:[%s41_s1 + $0x10] sm:$0xff] %v4_v0  ;;  %14 = vst [vmem:[%s41_s1 + $0x18] sm:$0xff] %v4_v0 }

// kernel: tile.19
= control target key start
LH: loop header
LB: loop body
LE: loop exit
PB: predicated region body
PF: predicated region fallthrough
CT: control target
= control target key end

     0   :  { %s259_s10 = smov 124   ;;  %s260_s11 = smov 116   ;;  %vm3_vm0 = vcmask 31744   ;;  %vm9_vm1 = vcmask 1048544   ;;  %vm15_vm2 = vcmask 1015744   ;;  %vm21_vm3 = vcmask 982944   ;;  %s399_s0 = inlined_call_operand.vmem [shape: f32[32,4], index: 0, kind: input, shape index: {}]   ;;  %s400_s1 = inlined_call_operand.vmem [shape: f32[1,128], index: 1, kind: output, shape index: {}]  }
   0x1   :  { %v197_v0 = vld [vmem:[%s399_s0 + $0x1f] sm:$0x1]   ;;  %v199_v1 = vld [vmem:[%s399_s0 + $0x1d] sm:$0x1]   ;;  %v198_v2 = vld [vmem:[%s399_s0 + $0x1e] sm:$0x1]  }
   0x2   :  { %7 = vrot.lane.b32.xlu0 %v197_v0, %s259_s10  ;;  %19 = vrot.lane.b32.xlu1 %v199_v1, %s260_s11  ;;  %v200_v3 = vld [vmem:[%s399_s0 + $0x1c] sm:$0x1]   ;;  %s261_s16 = smov 120   ;;  %s262_s17 = smov 112   ;;  %v201_v4 = vld [vmem:[%s399_s0 + $0x1b] sm:$0x1]  }
   0x3   :  { %v202_v5 = vld [vmem:[%s399_s0 + $0x1a] sm:$0x1]   ;;  %s263_s22 = smov 108   ;;  %s264_s23 = smov 104   ;;  %v203_v6 = vld [vmem:[%s399_s0 + $0x19] sm:$0x1]  }
   0x4   :  { %v204_v7 = vld [vmem:[%s399_s0 + $0x18] sm:$0x1]   ;;  %s265_s28 = smov 100   ;;  %s266_s29 = smov 96   ;;  %v205_v8 = vld [vmem:[%s399_s0 + $0x17] sm:$0x1]  }
   0x5   :  { %v206_v9 = vld [vmem:[%s399_s0 + $0x16] sm:$0x1]   ;;  %v2_v10 = vld [vmem:[%s399_s0] sm:$0x1]   ;;  %s267_s7 = smov 92   ;;  %s268_s8 = smov 88  }
   0x6   :  { %13 = vrot.lane.b32.xlu0 %v198_v2, %s261_s16  ;;  %25 = vrot.lane.b32.xlu1 %v200_v3, %s262_s17  ;;  %4 = vst.msk [vmem:[#allocation0] sm:$0x1] %vm3_vm0, %v2_v10   ;;  %v207_v11 = vld [vmem:[%s399_s0 + $0x15] sm:$0x1]   ;;  %v208_v12 = vld [vmem:[%s399_s0 + $0x14] sm:$0x1]  }
   0x7   :  { %s269_s13 = smov 84   ;;  %s270_s14 = smov 80   ;;  %v209_v13 = vld [vmem:[%s399_s0 + $0x13] sm:$0x1]   ;;  %v210_v14 = vld [vmem:[%s399_s0 + $0x12] sm:$0x1]  }
   0x8   :  { %s271_s19 = smov 76   ;;  %s272_s20 = smov 72   ;;  %v211_v15 = vld [vmem:[%s399_s0 + $0x11] sm:$0x1]   ;;  %v212_v16 = vld [vmem:[%s399_s0 + $0x10] sm:$0x1]  }
   0x9   :  { %s273_s25 = smov 68   ;;  %s274_s26 = smov 64   ;;  %v213_v17 = vld [vmem:[%s399_s0 + $0xf] sm:$0x1]   ;;  %v214_v18 = vld [vmem:[%s399_s0 + $0xe] sm:$0x1]  }
   0xa   :  { %31 = vrot.lane.b32.xlu0 %v201_v4, %s263_s22  ;;  %37 = vrot.lane.b32.xlu1 %v202_v5, %s264_s23  ;;  %s275_s2 = smov 60   ;;  %s276_s3 = smov 56   ;;  %v215_v19 = vld [vmem:[%s399_s0 + $0xd] sm:$0x1]   ;;  %v216_v20 = vld [vmem:[%s399_s0 + $0xc] sm:$0x1]  }
   0xb   :  { %s278_s9 = smov 48   ;;  %v217_v21 = vld [vmem:[%s399_s0 + $0xb] sm:$0x1]   ;;  %v218_v22 = vld [vmem:[%s399_s0 + $0xa] sm:$0x1]   ;;  %s280_s15 = smov 40  }
   0xc   :  { %v219_v23 = vld [vmem:[%s399_s0 + $0x9] sm:$0x1]   ;;  %v220_v24 = vld [vmem:[%s399_s0 + $0x8] sm:$0x1]   ;;  %s282_s21 = smov 32   ;;  %s284_s27 = smov 24  }
   0xd   :  { %v221_v25 = vld [vmem:[%s399_s0 + $0x7] sm:$0x1]   ;;  %v222_v26 = vld [vmem:[%s399_s0 + $0x6] sm:$0x1]   ;;  %v223_v27 = vld [vmem:[%s399_s0 + $0x5] sm:$0x1]  }
   0xe   :  { %43 = vrot.lane.b32.xlu0 %v203_v6, %s265_s28  ;;  %49 = vrot.lane.b32.xlu1 %v204_v7, %s266_s29  ;;  %v224_v28 = vld [vmem:[%s399_s0 + $0x4] sm:$0x1]   ;;  %s286_s4 = smov 16   ;;  %v225_v29 = vld [vmem:[%s399_s0 + $0x3] sm:$0x1]   ;;  %s288_s10 = smov 8  }
   0xf   :  { %v226_v30 = vld [vmem:[%s399_s0 + $0x2] sm:$0x1]   ;;  %v227_v31 = vld [vmem:[%s399_s0 + $0x1] sm:$0x1]   ;;  %s289_s0 = smov 4   ;;  %vm27_vm4 = vcmask 950144  }
  0x10   :  { %vm33_vm5 = vcmask 917344   ;;  %vm39_vm6 = vcmask 884544   ;;  %vm45_vm7 = vcmask 851744   ;;  %vm51_vm8 = vcmask 818944  }
  0x11   :  { %vm57_vm9 = vcmask 786144   ;;  %vm63_vm10 = vcmask 753344   ;;  %vm69_vm11 = vcmask 720544   ;;  %vm75_vm12 = vcmask 687744  }
  0x12   :  { %55 = vrot.lane.b32.xlu0 %v205_v8, %s267_s7  ;;  %61 = vrot.lane.b32.xlu1 %v206_v9, %s268_s8  ;;  %s277_s8 = smov 52   ;;  %vm81_vm13 = vcmask 654944   ;;  %vm87_vm14 = vcmask 622144   ;;  %vm93_vm15 = vcmask 589344   ;;  %vm99_vm0 = vcmask 556544  }
  0x16   :  { %67 = vrot.lane.b32.xlu0 %v207_v11, %s269_s13  ;;  %73 = vrot.lane.b32.xlu1 %v208_v12, %s270_s14  ;;  %s279_s14 = smov 44  }
  0x1a   :  { %79 = vrot.lane.b32.xlu0 %v209_v13, %s271_s19  ;;  %85 = vrot.lane.b32.xlu1 %v210_v14, %s272_s20  ;;  %s281_s20 = smov 36  }
  0x1e   :  { %91 = vrot.lane.b32.xlu0 %v211_v15, %s273_s25  ;;  %97 = vrot.lane.b32.xlu1 %v212_v16, %s274_s26  ;;  %s283_s26 = smov 28  }
  0x22   :  { %103 = vrot.lane.b32.xlu0 %v213_v17, %s275_s2  ;;  %109 = vrot.lane.b32.xlu1 %v214_v18, %s276_s3  ;;  %s285_s3 = smov 20  }
  0x26   :  { %115 = vrot.lane.b32.xlu0 %v215_v19, %s277_s8  ;;  %121 = vrot.lane.b32.xlu1 %v216_v20, %s278_s9  ;;  %s287_s9 = smov 12  }
  0x2a   :  { %127 = vrot.lane.b32.xlu0 %v217_v21, %s279_s14  ;;  %133 = vrot.lane.b32.xlu1 %v218_v22, %s280_s15 }
  0x2e   :  { %139 = vrot.lane.b32.xlu0 %v219_v23, %s281_s20  ;;  %145 = vrot.lane.b32.xlu1 %v220_v24, %s282_s21 }
  0x32   :  { %151 = vrot.lane.b32.xlu0 %v221_v25, %s283_s26  ;;  %157 = vrot.lane.b32.xlu1 %v222_v26, %s284_s27 }
  0x36   :  { %163 = vrot.lane.b32.xlu0 %v223_v27, %s285_s3  ;;  %169 = vrot.lane.b32.xlu1 %v224_v28, %s286_s4 }
  0x3a   :  { %175 = vrot.lane.b32.xlu0 %v225_v29, %s287_s9  ;;  %181 = vrot.lane.b32.xlu1 %v226_v30, %s288_s10 }
  0x3e   :  { %187 = vrot.lane.b32.xlu0 %v227_v31, %s289_s0 }
  0x74   :  { %v8_v32 = vpop.permute.xlu0 %7   ;;  %v20_v33 = vpop.permute.xlu1 %19  }
  0x75   :  { %10 = vst.msk [vmem:[#allocation0] sm:$0x1] %vm9_vm1, %v8_v32   ;;  %vm105_vm1 = vcmask 523744  }
  0x78   :  { %v14_v34 = vpop.permute.xlu0 %13   ;;  %v26_v35 = vpop.permute.xlu1 %25  }
  0x79   :  { %16 = vst.msk [vmem:[#allocation0] sm:$0x1] %vm15_vm2, %v14_v34   ;;  %vm111_vm2 = vcmask 490944  }
  0x7a   :  { %22 = vst.msk [vmem:[#allocation0] sm:$0x1] %vm21_vm3, %v20_v33   ;;  %vm117_vm3 = vcmask 458144  }
  0x7b   :  { %28 = vst.msk [vmem:[#allocation0] sm:$0x1] %vm27_vm4, %v26_v35   ;;  %vm123_vm4 = vcmask 425344  }
  0x7c   :  { %v32_v36 = vpop.permute.xlu0 %31   ;;  %v38_v37 = vpop.permute.xlu1 %37  }
  0x7d   :  { %34 = vst.msk [vmem:[#allocation0] sm:$0x1] %vm33_vm5, %v32_v36   ;;  %vm129_vm5 = vcmask 392544  }
  0x7e   :  { %40 = vst.msk [vmem:[#allocation0] sm:$0x1] %vm39_vm6, %v38_v37   ;;  %vm135_vm6 = vcmask 359744  }
  0x80   :  { %v44_v38 = vpop.permute.xlu0 %43   ;;  %v50_v39 = vpop.permute.xlu1 %49  }
  0x81   :  { %46 = vst.msk [vmem:[#allocation0] sm:$0x1] %vm45_vm7, %v44_v38   ;;  %vm141_vm7 = vcmask 326944  }
  0x82   :  { %52 = vst.msk [vmem:[#allocation0] sm:$0x1] %vm51_vm8, %v50_v39   ;;  %vm147_vm8 = vcmask 294144  }
  0x84   :  { %v56_v40 = vpop.permute.xlu0 %55   ;;  %v62_v41 = vpop.permute.xlu1 %61  }
  0x85   :  { %58 = vst.msk [vmem:[#allocation0] sm:$0x1] %vm57_vm9, %v56_v40   ;;  %vm153_vm9 = vcmask 261344  }
  0x86   :  { %64 = vst.msk [vmem:[#allocation0] sm:$0x1] %vm63_vm10, %v62_v41   ;;  %vm159_vm10 = vcmask 228544  }
  0x88   :  { %v68_v42 = vpop.permute.xlu0 %67   ;;  %v74_v43 = vpop.permute.xlu1 %73  }
  0x89   :  { %70 = vst.msk [vmem:[#allocation0] sm:$0x1] %vm69_vm11, %v68_v42   ;;  %vm165_vm11 = vcmask 195744  }
  0x8a   :  { %76 = vst.msk [vmem:[#allocation0] sm:$0x1] %vm75_vm12, %v74_v43   ;;  %vm171_vm12 = vcmask 162944  }
  0x8c   :  { %v80_v44 = vpop.permute.xlu0 %79   ;;  %v86_v45 = vpop.permute.xlu1 %85  }
  0x8d   :  { %82 = vst.msk [vmem:[#allocation0] sm:$0x1] %vm81_vm13, %v80_v44   ;;  %vm177_vm13 = vcmask 130144  }
  0x8e   :  { %88 = vst.msk [vmem:[#allocation0] sm:$0x1] %vm87_vm14, %v86_v45   ;;  %vm183_vm14 = vcmask 97344  }
  0x90   :  { %v92_v46 = vpop.permute.xlu0 %91   ;;  %v98_v47 = vpop.permute.xlu1 %97  }
  0x91   :  { %94 = vst.msk [vmem:[#allocation0] sm:$0x1] %vm93_vm15, %v92_v46   ;;  %vm189_vm15 = vcmask 64544  }
  0x92   :  { %100 = vst.msk [vmem:[#allocation0] sm:$0x1] %vm99_vm0, %v98_v47  }
  0x94   :  { %v104_v48 = vpop.permute.xlu0 %103   ;;  %v110_v49 = vpop.permute.xlu1 %109  }
  0x95   :  { %106 = vst.msk [vmem:[#allocation0] sm:$0x1] %vm105_vm1, %v104_v48  }
  0x96   :  { %112 = vst.msk [vmem:[#allocation0] sm:$0x1] %vm111_vm2, %v110_v49  }
  0x98   :  { %v116_v50 = vpop.permute.xlu0 %115   ;;  %v122_v51 = vpop.permute.xlu1 %121  }
  0x99   :  { %118 = vst.msk [vmem:[#allocation0] sm:$0x1] %vm117_vm3, %v116_v50  }
  0x9a   :  { %124 = vst.msk [vmem:[#allocation0] sm:$0x1] %vm123_vm4, %v122_v51  }
  0x9c   :  { %v128_v52 = vpop.permute.xlu0 %127   ;;  %v134_v53 = vpop.permute.xlu1 %133  }
  0x9d   :  { %130 = vst.msk [vmem:[#allocation0] sm:$0x1] %vm129_vm5, %v128_v52  }
  0x9e   :  { %136 = vst.msk [vmem:[#allocation0] sm:$0x1] %vm135_vm6, %v134_v53  }
  0xa0   :  { %v140_v54 = vpop.permute.xlu0 %139   ;;  %v146_v55 = vpop.permute.xlu1 %145  }
  0xa1   :  { %142 = vst.msk [vmem:[#allocation0] sm:$0x1] %vm141_vm7, %v140_v54  }
  0xa2   :  { %148 = vst.msk [vmem:[#allocation0] sm:$0x1] %vm147_vm8, %v146_v55  }
  0xa4   :  { %v152_v56 = vpop.permute.xlu0 %151   ;;  %v158_v57 = vpop.permute.xlu1 %157  }
  0xa5   :  { %154 = vst.msk [vmem:[#allocation0] sm:$0x1] %vm153_vm9, %v152_v56  }
  0xa6   :  { %160 = vst.msk [vmem:[#allocation0] sm:$0x1] %vm159_vm10, %v158_v57  }
  0xa8   :  { %v164_v58 = vpop.permute.xlu0 %163   ;;  %v170_v59 = vpop.permute.xlu1 %169  }
  0xa9   :  { %166 = vst.msk [vmem:[#allocation0] sm:$0x1] %vm165_vm11, %v164_v58  }
  0xaa   :  { %172 = vst.msk [vmem:[#allocation0] sm:$0x1] %vm171_vm12, %v170_v59  }
  0xac   :  { %v176_v60 = vpop.permute.xlu0 %175   ;;  %v182_v61 = vpop.permute.xlu1 %181  }
  0xad   :  { %178 = vst.msk [vmem:[#allocation0] sm:$0x1] %vm177_vm13, %v176_v60  }
  0xae   :  { %184 = vst.msk [vmem:[#allocation0] sm:$0x1] %vm183_vm14, %v182_v61  }
  0xb0   :  { %v188_v62 = vpop.permute.xlu0 %187  }
  0xb1   :  { %190 = vst.msk [vmem:[#allocation0] sm:$0x1] %vm189_vm15, %v188_v62  }
  0xb8   :  { %v194_v63 = vld [vmem:[#allocation0] sm:$0x1] }
  0xb9   :  { %196 = vst [vmem:[%s400_s1] sm:$0x1] %v194_v63 }

// kernel: bottleneck_forward.1
= control target key start
LH: loop header
LB: loop body
LE: loop exit
PB: predicated region body
PF: predicated region fallthrough
CT: control target
= control target key end

     0   :  { %s1934_s27 = smov 0   ;;  %s2662_s0 = inlined_call_operand.vmem [shape: f32[2,8,512], index: 0, kind: input, shape index: {}]   ;;  %s2663_s1 = inlined_call_operand.vmem [shape: f32[512,128], index: 1, kind: input, shape index: {}]   ;;  %s2664_s2 = inlined_call_operand.vmem [shape: f32[1,128], index: 2, kind: input, shape index: {}]   ;;  %s2665_s3 = inlined_call_operand.vmem [shape: f32[3,128,128], index: 3, kind: input, shape index: {}]   ;;  %s2666_s4 = inlined_call_operand.vmem [shape: f32[1,128], index: 4, kind: input, shape index: {}]   ;;  %s2667_s5 = inlined_call_operand.vmem [shape: f32[128,512], index: 5, kind: input, shape index: {}]   ;;  %s2668_s6 = inlined_call_operand.vmem [shape: f32[1,512], index: 6, kind: input, shape index: {}]   ;;  %s2669_s7 = inlined_call_operand.vmem [shape: f32[3,512], index: 7, kind: input, shape index: {}]   ;;  %s2670_s8 = inlined_call_operand.vmem [shape: f32[2,8,512], index: 8, kind: output, shape index: {}]  }
   0x1 LB: > { %s1366_s28 = sadd.s32 4294967295, %s1879_s27   ;;  %p1370_p0 = scmp.ge.s32.totalorder %s1879_s27, 1  ;;  %s1879_s27 = sphi %s1934_s27, %s18_s27  }
   0x2   : > { %p262_p1 = scmp.lt.s32.totalorder %s1879_s27, 3 }
   0x4   : > { %p263_p2 = pnand %p1370_p0, %p262_p1 }
   0x5   : > { %v326_v0 = vld [vmem:[%s2663_s1 + $0x80] sm:$0xff] (!%p263_p2)  ;;  %v327_v1 = vld [vmem:[%s2663_s1 + $0x88] sm:$0xff] (!%p263_p2)  ;;  %v328_v11 = vld [vmem:[%s2663_s1 + $0x90] sm:$0xff] (!%p263_p2)  ;;  %p2016_p3 = scmp.lt.s32.totalorder (!%p263_p2), %s1366_s28, 1  ;;  %vm1882_vm0 = vmmov (!%p263_p2), 0   ;;  %s1884_s20 = smov (!%p263_p2), 16  }
   0x6   : > { %266 = sbr.rel (%p263_p2) target bundleno = 1278 (0x4fe), region = 52  ;;  %v310_v2 = vld [vmem:[%s2663_s1] sm:$0xff] (!%p263_p2)  ;;  %v1647_v3 = vpack.c.bf16 (!%p263_p2), %v327_v1, %v326_v0  ;;  %v311_v4 = vld [vmem:[%s2663_s1 + $0x8] sm:$0xff] (!%p263_p2)  ;;  %v329_v13 = vld [vmem:[%s2663_s1 + $0x98] sm:$0xff] (!%p263_p2)  ;;  %s1885_s21 = smov (!%p263_p2), 32  }
   0x7   : > { %v358_v5 = vld [vmem:[%s2663_s1 + $0x180] sm:$0xff] (!%p263_p2)  ;;  %v359_v6 = vld [vmem:[%s2663_s1 + $0x188] sm:$0xff] (!%p263_p2)  ;;  %v1649_v7 = vpack.c.bf16 (!%p263_p2), %v311_v4, %v310_v2  ;;  %v312_v14 = vld [vmem:[%s2663_s1 + $0x10] sm:$0xff] (!%p263_p2)  ;;  %v1651_v16 = vpack.c.bf16 (!%p263_p2), %v329_v13, %v328_v11  ;;  %s1886_s22 = smov (!%p263_p2), 64   ;;  %s1887_s15 = smov (!%p263_p2), 127  }
   0x8   : > { %v1679_v8 = vpack.c.bf16 (!%p263_p2), %v359_v6, %v358_v5  ;;  %v342_v9 = vld [vmem:[%s2663_s1 + $0x100] sm:$0xff] (!%p263_p2)  ;;  %v343_v10 = vld [vmem:[%s2663_s1 + $0x108] sm:$0xff] (!%p263_p2)  ;;  %1648 = vmatprep.subr.bf16.mxu0 (!%p263_p2), %v1647_v3  ;;  %v313_v15 = vld [vmem:[%s2663_s1 + $0x18] sm:$0xff] (!%p263_p2)  ;;  %s1888_s23 = smov (!%p263_p2), 1  }
   0x9   : > { %v1681_v12 = vpack.c.bf16 (!%p263_p2), %v343_v10, %v342_v9  ;;  %1650 = vmatpush3.bf16.msra.mxu0 (!%p263_p2), %v1649_v7  ;;  %v1653_v17 = vpack.c.bf16 (!%p263_p2), %v313_v15, %v312_v14  ;;  %v360_v18 = vld [vmem:[%s2663_s1 + $0x190] sm:$0xff] (!%p263_p2)  ;;  %v361_v19 = vld [vmem:[%s2663_s1 + $0x198] sm:$0xff] (!%p263_p2)  ;;  %v330_v23 = vld [vmem:[%s2663_s1 + $0xa0] sm:$0xff] (!%p263_p2) }
   0xa   : > { %1680 = vmatprep.subr.bf16.mxu1 (!%p263_p2), %v1679_v8  ;;  %v344_v20 = vld [vmem:[%s2663_s1 + $0x110] sm:$0xff] (!%p263_p2)  ;;  %v1683_v21 = vpack.c.bf16 (!%p263_p2), %v361_v19, %v360_v18  ;;  %v345_v22 = vld [vmem:[%s2663_s1 + $0x118] sm:$0xff] (!%p263_p2)  ;;  %v331_v24 = vld [vmem:[%s2663_s1 + $0xa8] sm:$0xff] (!%p263_p2)  ;;  %1652 = vmatprep.subr.bf16.mxu0 (!%p263_p2), %v1651_v16 }
   0xb   : > { %1682 = vmatpush3.bf16.msra.mxu1 (!%p263_p2), %v1681_v12  ;;  %v1685_v25 = vpack.c.bf16 (!%p263_p2), %v345_v22, %v344_v20  ;;  %v1655_v26 = vpack.c.bf16 (!%p263_p2), %v331_v24, %v330_v23  ;;  %v314_v27 = vld [vmem:[%s2663_s1 + $0x20] sm:$0xff] (!%p263_p2)  ;;  %v315_v28 = vld [vmem:[%s2663_s1 + $0x28] sm:$0xff] (!%p263_p2)  ;;  %v332_v35 = vld [vmem:[%s2663_s1 + $0xb0] sm:$0xff] (!%p263_p2) }
   0xc   : > { %v362_v29 = vld [vmem:[%s2663_s1 + $0x1a0] sm:$0xff] (!%p263_p2)  ;;  %1684 = vmatprep.subr.bf16.mxu1 (!%p263_p2), %v1683_v21  ;;  %v363_v30 = vld [vmem:[%s2663_s1 + $0x1a8] sm:$0xff] (!%p263_p2)  ;;  %v1657_v33 = vpack.c.bf16 (!%p263_p2), %v315_v28, %v314_v27  ;;  %v333_v36 = vld [vmem:[%s2663_s1 + $0xb8] sm:$0xff] (!%p263_p2) }
   0xd   : > { %v346_v31 = vld [vmem:[%s2663_s1 + $0x120] sm:$0xff]  ;;  %v347_v32 = vld [vmem:[%s2663_s1 + $0x128] sm:$0xff]  ;;  %1654 = vmatpush3.bf16.msra.mxu0 %v1653_v17  ;;  %v1687_v34 = vpack.c.bf16 %v363_v30, %v362_v29  ;;  %v316_v37 = vld [vmem:[%s2663_s1 + $0x30] sm:$0xff]  ;;  %v1659_v39 = vpack.c.bf16 %v333_v36, %v332_v35  ;;  %s2689_s28 = smov (!%p2016_p3, %s1366_s28), 1 }
   0xe   : > { %1656 = vmatprep.subr.bf16.mxu0 %v1655_v26  ;;  %v1689_v38 = vpack.c.bf16 %v347_v32, %v346_v31  ;;  %v317_v40 = vld [vmem:[%s2663_s1 + $0x38] sm:$0xff]  ;;  %v364_v41 = vld [vmem:[%s2663_s1 + $0x1b0] sm:$0xff]  ;;  %v334_v46 = vld [vmem:[%s2663_s1 + $0xc0] sm:$0xff]  ;;  %s1419_s17 = sshll.u32 %s2689_s28, 5 }
   0xf   : > { %1686 = vmatpush3.bf16.msra.mxu1 %v1685_v25  ;;  %v365_v42 = vld [vmem:[%s2663_s1 + $0x1b8] sm:$0xff]  ;;  %v348_v44 = vld [vmem:[%s2663_s1 + $0x130] sm:$0xff]  ;;  %v335_v47 = vld [vmem:[%s2663_s1 + $0xc8] sm:$0xff]  ;;  %v1661_v48 = vpack.c.bf16 %v317_v40, %v316_v37  ;;  %s2110_s11 = scalar_lea.vmem %s2662_s0, %s1419_s17  ;;  %s305_s10 = scalar_lea.vmem %s2670_s8, %s1419_s17 }
  0x10   : > { %1688 = vmatprep.subr.bf16.mxu1 %v1687_v34  ;;  %v1691_v43 = vpack.c.bf16 %v365_v42, %v364_v41  ;;  %v349_v45 = vld [vmem:[%s2663_s1 + $0x138] sm:$0xff]  ;;  %v366_v49 = vld [vmem:[%s2663_s1 + $0x1c0] sm:$0xff]  ;;  %v367_v50 = vld [vmem:[%s2663_s1 + $0x1c8] sm:$0xff]  ;;  %v1663_v52 = vpack.c.bf16 %v335_v47, %v334_v46  ;;  %v1881_v41 = vmov 0.0|0.0  }
  0x11   : > { %1658 = vmatpush3.bf16.msra.mxu0 %v1657_v33  ;;  %v1693_v51 = vpack.c.bf16 %v349_v45, %v348_v44  ;;  %v318_v53 = vld [vmem:[%s2663_s1 + $0x40] sm:$0xff]  ;;  %v319_v54 = vld [vmem:[%s2663_s1 + $0x48] sm:$0xff]  ;;  %v1695_v56 = vpack.c.bf16 %v367_v50, %v366_v49  ;;  %v336_v58 = vld [vmem:[%s2663_s1 + $0xd0] sm:$0xff] }
  0x12   : > { %1660 = vmatprep.subr.bf16.mxu0 %v1659_v39  ;;  %v350_v55 = vld [vmem:[%s2663_s1 + $0x140] sm:$0xff]  ;;  %v351_v57 = vld [vmem:[%s2663_s1 + $0x148] sm:$0xff]  ;;  %v337_v59 = vld [vmem:[%s2663_s1 + $0xd8] sm:$0xff]  ;;  %v1665_v62 = vpack.c.bf16 %v319_v54, %v318_v53 }
  0x13   : > { %1690 = vmatpush3.bf16.msra.mxu1 %v1689_v38  ;;  %v368_v60 = vld [vmem:[%s2663_s1 + $0x1d0] sm:$0xff]  ;;  %v369_v61 = vld [vmem:[%s2663_s1 + $0x1d8] sm:$0xff]  ;;  %v1697_v63 = vpack.c.bf16 %v351_v57, %v350_v55  ;;  %v1667_v0 = vpack.c.bf16 %v337_v59, %v336_v58  ;;  %v338_v6 = vld [vmem:[%s2663_s1 + $0xe0] sm:$0xff] }
  0x14   : > { %1692 = vmatprep.subr.bf16.mxu1 %v1691_v43  ;;  %v320_v1 = vld [vmem:[%s2663_s1 + $0x50] sm:$0xff]  ;;  %v321_v2 = vld [vmem:[%s2663_s1 + $0x58] sm:$0xff]  ;;  %v1699_v4 = vpack.c.bf16 %v369_v61, %v368_v60  ;;  %v339_v7 = vld [vmem:[%s2663_s1 + $0xe8] sm:$0xff] }
  0x15   : > { %1662 = vmatpush3.bf16.msra.mxu0 %v1661_v48  ;;  %v352_v3 = vld [vmem:[%s2663_s1 + $0x150] sm:$0xff]  ;;  %v353_v5 = vld [vmem:[%s2663_s1 + $0x158] sm:$0xff]  ;;  %v370_v8 = vld [vmem:[%s2663_s1 + $0x1e0] sm:$0xff]  ;;  %v1669_v10 = vpack.c.bf16 %v321_v2, %v320_v1  ;;  %v1671_v14 = vpack.c.bf16 %v339_v7, %v338_v6 }
  0x16   : > { %1664 = vmatprep.subr.bf16.mxu0 %v1663_v52  ;;  %v371_v9 = vld [vmem:[%s2663_s1 + $0x1e8] sm:$0xff]  ;;  %v322_v11 = vld [vmem:[%s2663_s1 + $0x60] sm:$0xff]  ;;  %v1701_v13 = vpack.c.bf16 %v353_v5, %v352_v3  ;;  %v340_v19 = vld [vmem:[%s2663_s1 + $0xf0] sm:$0xff] }
  0x17   : > { %1694 = vmatpush3.bf16.msra.mxu1 %v1693_v51  ;;  %v323_v12 = vld [vmem:[%s2663_s1 + $0x68] sm:$0xff]  ;;  %v354_v15 = vld [vmem:[%s2663_s1 + $0x160] sm:$0xff]  ;;  %v1703_v18 = vpack.c.bf16 %v371_v9, %v370_v8  ;;  %v341_v20 = vld [vmem:[%s2663_s1 + $0xf8] sm:$0xff] }
  0x18   : > { %1696 = vmatprep.subr.bf16.mxu1 %v1695_v56  ;;  %v355_v16 = vld [vmem:[%s2663_s1 + $0x168] sm:$0xff]  ;;  %v309_v21 = vld [vmem:[%s2110_s11 + $0x18] sm:$0xff]  ;;  %v372_v22 = vld [vmem:[%s2663_s1 + $0x1f0] sm:$0xff]  ;;  %v1673_v24 = vpack.c.bf16 %v323_v12, %v322_v11  ;;  %v1675_v26 = vpack.c.bf16 %v341_v20, %v340_v19 }
  0x19   : > { %1666 = vmatpush3.bf16.msra.mxu0 %v1665_v62  ;;  %v307_v17 = vld [vmem:[%s2110_s11 + $0x8] sm:$0xff]  ;;  %v373_v23 = vld [vmem:[%s2663_s1 + $0x1f8] sm:$0xff]  ;;  %515 = vmatprep.mubr.f32.mxu1 %v309_v21  ;;  %v1705_v25 = vpack.c.bf16 %v355_v16, %v354_v15  ;;  %v324_v27 = vld [vmem:[%s2663_s1 + $0x70] sm:$0xff]  ;;  %v1883_v21 = vmov 0.0  }
  0x1a   : > { %1668 = vmatprep.subr.bf16.mxu0 %v1667_v0  ;;  %445 = vmatprep.mubr.f32.mxu0 %v307_v17  ;;  %v325_v28 = vld [vmem:[%s2663_s1 + $0x78] sm:$0xff]  ;;  %v1707_v29 = vpack.c.bf16 %v373_v23, %v372_v22  ;;  %v356_v30 = vld [vmem:[%s2663_s1 + $0x170] sm:$0xff]  ;;  %v544_v34 = vld [vmem:[%s2665_s3] sm:$0xff] }
  0x1b   : > { %1698 = vmatpush3.bf16.msra.mxu1 %v1697_v63  ;;  %v357_v31 = vld [vmem:[%s2663_s1 + $0x178] sm:$0xff]  ;;  %v1677_v32 = vpack.c.bf16 %v325_v28, %v324_v27  ;;  %v545_v35 = vld [vmem:[%s2665_s3 + $0x8] sm:$0xff]  ;;  %v1376_v36 = vld [vmem:[%s2665_s3 + $0x80] sm:$0xff] }
  0x1c   : > { %1700 = vmatprep.subr.bf16.mxu1 %v1699_v4  ;;  %v1709_v33 = vpack.c.bf16 %v357_v31, %v356_v30  ;;  %v1377_v37 = vld [vmem:[%s2665_s3 + $0x88] sm:$0xff]  ;;  %v2169_v38 = vld [vmem:[%s2110_s11] sm:$0xff]  ;;  %v1712_v39 = vpack.c.bf16 %v545_v35, %v544_v34  ;;  %v2172_v40 = vld [vmem:[%s2110_s11 + $0x10] sm:$0xff] }
  0x1d   : > { %1670 = vmatpush3.bf16.msra.mxu0 %v1669_v10  ;;  %v1736_v42 = vpack.c.bf16 %v1377_v37, %v1376_v36  ;;  %v546_v43 = vld [vmem:[%s2665_s3 + $0x10] sm:$0xff]  ;;  %v547_v44 = vld [vmem:[%s2665_s3 + $0x18] sm:$0xff]  ;;  %v548_v49 = vld [vmem:[%s2665_s3 + $0x20] sm:$0xff] }
  0x1e   : > { %1672 = vmatprep.subr.bf16.mxu0 %v1671_v14  ;;  %v1378_v45 = vld [vmem:[%s2665_s3 + $0x90] sm:$0xff]  ;;  %v1379_v46 = vld [vmem:[%s2665_s3 + $0x98] sm:$0xff]  ;;  %v1715_v47 = vpack.c.bf16 %v547_v44, %v546_v43  ;;  %v549_v50 = vld [vmem:[%s2665_s3 + $0x28] sm:$0xff] }
  0x1f   : > { %1702 = vmatpush3.bf16.msra.mxu1 %v1701_v13  ;;  %v1739_v48 = vpack.c.bf16 %v1379_v46, %v1378_v45  ;;  %v1380_v51 = vld [vmem:[%s2665_s3 + $0xa0] sm:$0xff]  ;;  %v1381_v52 = vld [vmem:[%s2665_s3 + $0xa8] sm:$0xff]  ;;  %v1718_v53 = vpack.c.bf16 %v549_v50, %v548_v49  ;;  %v550_v55 = vld [vmem:[%s2665_s3 + $0x30] sm:$0xff] }
  0x20   : > { %1704 = vmatprep.subr.bf16.mxu1 %v1703_v18  ;;  %v1742_v54 = vpack.c.bf16 %v1381_v52, %v1380_v51  ;;  %v551_v56 = vld [vmem:[%s2665_s3 + $0x38] sm:$0xff]  ;;  %v1382_v57 = vld [vmem:[%s2665_s3 + $0xb0] sm:$0xff]  ;;  %v552_v61 = vld [vmem:[%s2665_s3 + $0x40] sm:$0xff] }
  0x21   : > { %1674 = vmatpush3.bf16.msra.mxu0 %v1673_v24  ;;  %v1383_v58 = vld [vmem:[%s2665_s3 + $0xb8] sm:$0xff]  ;;  %v1721_v59 = vpack.c.bf16 %v551_v56, %v550_v55  ;;  %v553_v62 = vld [vmem:[%s2665_s3 + $0x48] sm:$0xff]  ;;  %v1384_v63 = vld [vmem:[%s2665_s3 + $0xc0] sm:$0xff] }
  0x22   : > { %1676 = vmatprep.subr.bf16.mxu0 %v1675_v26  ;;  %v1745_v60 = vpack.c.bf16 %v1383_v58, %v1382_v57  ;;  %v1385_v0 = vld [vmem:[%s2665_s3 + $0xc8] sm:$0xff]  ;;  %v1724_v1 = vpack.c.bf16 %v553_v62, %v552_v61  ;;  %v1386_v3 = vld [vmem:[%s2665_s3 + $0xd0] sm:$0xff]  ;;  %v1387_v4 = vld [vmem:[%s2665_s3 + $0xd8] sm:$0xff]  ;;  %v522_v26 = vlaneseq }
  0x23   : > { %1706 = vmatpush3.bf16.msra.mxu1 %v1705_v25  ;;  %v1748_v2 = vpack.c.bf16 %v1385_v0, %v1384_v63  ;;  %v1751_v5 = vpack.c.bf16 %v1387_v4, %v1386_v3  ;;  %v554_v6 = vld [vmem:[%s2665_s3 + $0x50] sm:$0xff]  ;;  %v555_v7 = vld [vmem:[%s2665_s3 + $0x58] sm:$0xff]  ;;  %v1388_v9 = vld [vmem:[%s2665_s3 + $0xe0] sm:$0xff] }
  0x24   : > { %1708 = vmatprep.subr.bf16.mxu1 %v1707_v29  ;;  %v1727_v8 = vpack.c.bf16 %v555_v7, %v554_v6  ;;  %v1389_v10 = vld [vmem:[%s2665_s3 + $0xe8] sm:$0xff]  ;;  %v556_v12 = vld [vmem:[%s2665_s3 + $0x60] sm:$0xff]  ;;  %v1390_v15 = vld [vmem:[%s2665_s3 + $0xf0] sm:$0xff]  ;;  %v2285_v31 = vshrl.u32 %v522_v26, 7 }
  0x25   : > { %1678 = vmatpush3.bf16.msra.mxu0 %v1677_v32  ;;  %v1754_v11 = vpack.c.bf16 %v1389_v10, %v1388_v9  ;;  %v557_v13 = vld [vmem:[%s2665_s3 + $0x68] sm:$0xff]  ;;  %v1391_v16 = vld [vmem:[%s2665_s3 + $0xf8] sm:$0xff]  ;;  %v558_v18 = vld [vmem:[%s2665_s3 + $0x70] sm:$0xff] }
  0x26   : > { %1711 = vmatprep.subr.bf16.mxu0 %v1881_v41  ;;  %v1730_v14 = vpack.c.bf16 %v557_v13, %v556_v12  ;;  %v1757_v17 = vpack.c.bf16 %v1391_v16, %v1390_v15  ;;  %v559_v19 = vld [vmem:[%s2665_s3 + $0x78] sm:$0xff]  ;;  %v1375_v23 = vld [vmem:[%s2664_s2] ss:$0 sm:$0xff]  ;;  %v1394_v34 = vld [vmem:[%s2665_s3 + $0x108] sm:$0xff]  ;;  %vm541_vm1 = vcmp.ge.s32.totalorder %v2285_v31, 1  ;;  %vm700_vm2 = vcmp.le.s32.totalorder %v2285_v31, 6 }
  0x27   : > { %1710 = vmatpush3.bf16.msra.mxu1 %v1709_v33  ;;  %v1733_v20 = vpack.c.bf16 %v559_v19, %v558_v18  ;;  %v1393_v33 = vld [vmem:[%s2665_s3 + $0x100] sm:$0xff]  ;;  %v1398_v45 = vld [vmem:[%s2665_s3 + $0x128] sm:$0xff]  ;;  %v802_v7 = vld [vmem:[%s2667_s5 + $0x10] sm:$0xff] }
  0x28   : > { %1735 = vmatprep.subr.bf16.mxu1 %v1881_v41  ;;  %446 = vmatmul.mubr.f32.vlgmr.msra.gmra.mrb[0].mxu0 %v2169_v38  ;;  %v1760_v36 = vpack.c.bf16 %v1394_v34, %v1393_v33  ;;  %v1397_v44 = vld [vmem:[%s2665_s3 + $0x120] sm:$0xff]  ;;  %v1402_v51 = vld [vmem:[%s2665_s3 + $0x148] sm:$0xff]  ;;  %v811_v12 = vld [vmem:[%s2667_s5 + $0x58] sm:$0xff] }
  0x29   : > { %1713 = vmatpush3.bf16.msra.mxu0 %v1712_v39  ;;  %1574 = vmatprep.mubr.msk.f32.mxu0 %vm1882_vm0, %v1883_v21  ;;  %v1395_v39 = vld [vmem:[%s2665_s3 + $0x110] sm:$0xff]  ;;  %v1766_v46 = vpack.c.bf16 %v1398_v45, %v1397_v44  ;;  %v1401_v50 = vld [vmem:[%s2665_s3 + $0x140] sm:$0xff]  ;;  %v1406_v57 = vld [vmem:[%s2665_s3 + $0x168] sm:$0xff] }
  0x2a   : > { %516 = vmatmul.mubr.f32.vlgmr.msra.gmra.mrb[0].mxu1 %v2172_v40  ;;  %1714 = vmatprep.subr.bf16.mxu0 %v1881_v41  ;;  %v1772_v52 = vpack.c.bf16 %v1402_v51, %v1401_v50  ;;  %v1405_v56 = vld [vmem:[%s2665_s3 + $0x160] sm:$0xff]  ;;  %v801_v63 = vld [vmem:[%s2667_s5 + $0x8] sm:$0xff]  ;;  %v815_v13 = vld [vmem:[%s2667_s5 + $0x78] sm:$0xff] }
  0x2b   : > { %1737 = vmatpush3.bf16.msra.mxu1 %v1736_v42  ;;  %1609 = vmatprep.mubr.msk.f32.mxu1 %vm1882_vm0, %v1883_v21  ;;  %v1396_v42 = vld [vmem:[%s2665_s3 + $0x118] sm:$0xff]  ;;  %v1778_v58 = vpack.c.bf16 %v1406_v57, %v1405_v56  ;;  %v805_v0 = vld [vmem:[%s2667_s5 + $0x28] sm:$0xff]  ;;  %v800_v3 = vld [vmem:[%s2667_s5] sm:$0xff]  ;;  %v1819_v15 = vpack.c.bf16 %v815_v13, %v811_v12 }
  0x2c   : > { %1738 = vmatprep.subr.bf16.mxu1 %v1881_v41  ;;  %v1763_v43 = vpack.c.bf16 %v1396_v42, %v1395_v39  ;;  %v804_v4 = vld [vmem:[%s2667_s5 + $0x20] sm:$0xff]  ;;  %v809_v9 = vld [vmem:[%s2667_s5 + $0x48] sm:$0xff]  ;;  %v810_v18 = vld [vmem:[%s2667_s5 + $0x50] sm:$0xff] }
  0x2d   : > { %1716 = vmatpush3.bf16.msra.mxu0 %v1715_v47  ;;  %v1399_v47 = vld [vmem:[%s2665_s3 + $0x130] sm:$0xff]  ;;  %v1785_v6 = vpack.c.bf16 %v804_v4, %v800_v3  ;;  %v808_v16 = vld [vmem:[%s2667_s5 + $0x40] sm:$0xff]  ;;  %v837_v50 = vld [vmem:[%s2667_s5 + $0x128] sm:$0xff] }
  0x2e   : > { %1717 = vmatprep.subr.bf16.mxu0 %v1881_v41  ;;  %v822_v33 = vld [vmem:[%s2667_s5 + $0xb0] sm:$0xff]  ;;  %v824_v44 = vld [vmem:[%s2667_s5 + $0xc0] sm:$0xff]  ;;  %v835_v51 = vld [vmem:[%s2667_s5 + $0x118] sm:$0xff] }
  0x2f   : > { %1740 = vmatpush3.bf16.msra.mxu1 %v1739_v48  ;;  %v1400_v48 = vld [vmem:[%s2665_s3 + $0x138] sm:$0xff]  ;;  %v828_v45 = vld [vmem:[%s2667_s5 + $0xe0] sm:$0xff] }
  0x30   : > { %1741 = vmatprep.subr.bf16.mxu1 %v1881_v41  ;;  %v1769_v49 = vpack.c.bf16 %v1400_v48, %v1399_v47  ;;  %v826_v47 = vld [vmem:[%s2667_s5 + $0xd0] sm:$0xff]  ;;  %v832_v56 = vld [vmem:[%s2667_s5 + $0x100] sm:$0xff] }
  0x31   : > { %1719 = vmatpush3.bf16.msra.mxu0 %v1718_v53  ;;  %v1403_v53 = vld [vmem:[%s2665_s3 + $0x150] sm:$0xff]  ;;  %v836_v57 = vld [vmem:[%s2667_s5 + $0x120] sm:$0xff] }
  0x32   : > { %1720 = vmatprep.subr.bf16.mxu0 %v1881_v41  ;;  %v830_v48 = vld [vmem:[%s2667_s5 + $0xf0] sm:$0xff]  ;;  %v840_v3 = vld [vmem:[%s2667_s5 + $0x140] sm:$0xff] }
  0x33   : > { %1743 = vmatpush3.bf16.msra.mxu1 %v1742_v54  ;;  %v1404_v54 = vld [vmem:[%s2665_s3 + $0x158] sm:$0xff]  ;;  %v844_v4 = vld [vmem:[%s2667_s5 + $0x160] sm:$0xff] }
  0x34   : > { %1744 = vmatprep.subr.bf16.mxu1 %v1881_v41  ;;  %v1775_v55 = vpack.c.bf16 %v1404_v54, %v1403_v53  ;;  %v1797_v53 = vpack.c.bf16 %v828_v45, %v824_v44  ;;  %v1829_v54 = vpack.c.bf16 %v830_v48, %v826_v47  ;;  %v1805_v12 = vpack.c.bf16 %v844_v4, %v840_v3  ;;  %v1410_v45 = vld [vmem:[%s2666_s4] ss:$0 sm:$0xff] }
  0x35   : > { %1722 = vmatpush3.bf16.msra.mxu0 %v1721_v59  ;;  %v1407_v59 = vld [vmem:[%s2665_s3 + $0x170] sm:$0xff] }
  0x36   : > { %1723 = vmatprep.subr.bf16.mxu0 %v1881_v41 }
  0x37   : > { %1746 = vmatpush3.bf16.msra.mxu1 %v1745_v60  ;;  %v1408_v60 = vld [vmem:[%s2665_s3 + $0x178] sm:$0xff] }
  0x38   : > { %1747 = vmatprep.subr.bf16.mxu1 %v1881_v41  ;;  %v1781_v61 = vpack.c.bf16 %v1408_v60, %v1407_v59  ;;  %v838_v60 = vld [vmem:[%s2667_s5 + $0x130] sm:$0xff] }
  0x39   : > { %1725 = vmatpush3.bf16.msra.mxu0 %v1724_v1  ;;  %v803_v1 = vld [vmem:[%s2667_s5 + $0x18] sm:$0xff] }
  0x3a   : > { %1726 = vmatprep.subr.bf16.mxu0 %v1881_v41 }
  0x3b   : > { %1749 = vmatpush3.bf16.msra.mxu1 %v1748_v2  ;;  %v807_v2 = vld [vmem:[%s2667_s5 + $0x38] sm:$0xff] }
  0x3c   : > { %1750 = vmatprep.subr.bf16.mxu1 %v1881_v41 }
  0x3d   : > { %1728 = vmatpush3.bf16.msra.mxu0 %v1727_v8  ;;  %v806_v8 = vld [vmem:[%s2667_s5 + $0x30] sm:$0xff] }
  0x3e   : > { %1729 = vmatprep.subr.bf16.mxu0 %v1881_v41  ;;  %v1817_v10 = vpack.c.bf16 %v806_v8, %v802_v7  ;;  %v846_v7 = vld [vmem:[%s2667_s5 + $0x170] sm:$0xff]  ;;  %v849_v8 = vld [vmem:[%s2667_s5 + $0x188] sm:$0xff] }
  0x3f   : > { %1752 = vmatpush3.bf16.msra.mxu1 %v1751_v5  ;;  %v1815_v5 = vpack.c.bf16 %v807_v2, %v803_v1  ;;  %v1801_v1 = vpack.c.bf16 %v836_v57, %v832_v56 }
  0x40   : > { %1753 = vmatprep.subr.bf16.mxu1 %v1881_v41 }
  0x41   : > { %1731 = vmatpush3.bf16.msra.mxu0 %v1730_v14 }
  0x42   : > { %1732 = vmatprep.subr.bf16.mxu0 %v1881_v41 }
  0x43   : > { %1755 = vmatpush3.bf16.msra.mxu1 %v1754_v11  ;;  %v813_v11 = vld [vmem:[%s2667_s5 + $0x68] sm:$0xff] }
  0x44   : > { %1756 = vmatprep.subr.bf16.mxu1 %v1881_v41  ;;  %v1787_v14 = vpack.c.bf16 %v813_v11, %v809_v9  ;;  %v853_v9 = vld [vmem:[%s2667_s5 + $0x1a8] sm:$0xff]  ;;  %v855_v11 = vld [vmem:[%s2667_s5 + $0x1b8] sm:$0xff] }
  0x45   : > { %1734 = vmatpush3.bf16.msra.mxu0 %v1733_v20  ;;  %v814_v20 = vld [vmem:[%s2667_s5 + $0x70] sm:$0xff] }
  0x46   : > { %1759 = vmatprep.subr.bf16.mxu0 %v1881_v41 }
  0x47   : > { %1758 = vmatpush3.bf16.msra.mxu1 %v1757_v17  ;;  %v812_v17 = vld [vmem:[%s2667_s5 + $0x60] sm:$0xff] }
  0x48   : > { %v1789_v19 = vpack.c.bf16 %v812_v17, %v808_v16  ;;  %v848_v16 = vld [vmem:[%s2667_s5 + $0x180] sm:$0xff] }
  0x49   : > { %v852_v17 = vld [vmem:[%s2667_s5 + $0x1a0] sm:$0xff] }
  0xfb   : > { %v1453_v22 = vpop.f32.mrb[0].mxu0 }
  0xfc   : > { %v1454_v24 = vpop.f32.mrb[1].mxu0 }
  0xfd   : > { %v1488_v25 = vpop.f32.mrb[0].mxu1  ;;  %v1455_v27 = vadd.f32 %v1454_v24, %v1453_v22  ;;  %v821_v22 = vld [vmem:[%s2667_s5 + $0xa8] sm:$0xff] }
  0xfe   : > { %v1489_v28 = vpop.f32.mrb[1].mxu1 }
  0xff   : > { %v1490_v29 = vadd.f32 %v1489_v28, %v1488_v25  ;;  %v448_v30 = vadd.f32 %v1455_v27, %v1375_v23  ;;  %v1821_v23 = vpack.c.bf16 %v814_v20, %v810_v18  ;;  %v819_v25 = vld [vmem:[%s2667_s5 + $0x98] sm:$0xff]  ;;  %v816_v28 = vld [vmem:[%s2667_s5 + $0x80] sm:$0xff]  ;;  %v850_v18 = vld [vmem:[%s2667_s5 + $0x190] sm:$0xff] }
 0x100   : > { %v823_v27 = vld [vmem:[%s2667_s5 + $0xb8] sm:$0xff]  ;;  %v854_v20 = vld [vmem:[%s2667_s5 + $0x1b0] sm:$0xff] }
 0x101   : > { %v518_v32 = vadd.f32 %v1490_v29, %v448_v30  ;;  %v1823_v29 = vpack.c.bf16 %v823_v27, %v819_v25  ;;  %v820_v30 = vld [vmem:[%s2667_s5 + $0xa0] sm:$0xff]  ;;  %v863_v27 = vld [vmem:[%s2667_s5 + $0x1f8] sm:$0xff] }
 0x102   : > { %v1793_v34 = vpack.c.bf16 %v820_v30, %v816_v28  ;;  %v856_v28 = vld [vmem:[%s2667_s5 + $0x1c0] sm:$0xff] }
 0x103   : > { %v521_v35 = vmax.f32 %v518_v32, 0.0  ;;  %v818_v32 = vld [vmem:[%s2667_s5 + $0x90] sm:$0xff]  ;;  %v860_v30 = vld [vmem:[%s2667_s5 + $0x1e0] sm:$0xff] }
 0x104   : > { %v1825_v39 = vpack.c.bf16 %v822_v33, %v818_v32  ;;  %v858_v32 = vld [vmem:[%s2667_s5 + $0x1d0] sm:$0xff] }
 0x105   : > { %v542_v37 = vrot.slane %v521_v35, 7  ;;  %1610 = vmatmul.mubr.f32.vlgmr.msra.gmra.mrb[2].mxu1 %v521_v35  ;;  %v701_v62 = vrot.slane %v521_v35, 1  ;;  %v825_v35 = vld [vmem:[%s2667_s5 + $0xc8] sm:$0xff]  ;;  %v862_v33 = vld [vmem:[%s2667_s5 + $0x1f0] sm:$0xff] }
 0x106   : > { %950 = vmatprep.mubr.f32.mxu1 %v1883_v21 }
 0x107   : > { %1575 = vmatmul.mubr.msk.f32.vlgmr.msra.gmra.mrb[2].mxu0 %vm541_vm1, %v542_v37  ;;  %v827_v37 = vld [vmem:[%s2667_s5 + $0xd8] sm:$0xff] }
 0x108   : > { %1761 = vmatpush3.bf16.msra.mxu0 %v1760_v36  ;;  %1644 = vmatprep.mubr.msk.f32.mxu0 %vm1882_vm0, %v1883_v21  ;;  %v829_v36 = vld [vmem:[%s2667_s5 + $0xe8] sm:$0xff] }
 0x109   : > { %1762 = vmatprep.subr.bf16.mxu0 %v1881_v41  ;;  %v1795_v42 = vpack.c.bf16 %v829_v36, %v825_v35  ;;  %v1845_v35 = vpack.c.bf16 %v862_v33, %v858_v32 }
 0x10c   : > { %1764 = vmatpush3.bf16.msra.mxu0 %v1763_v43  ;;  %v831_v43 = vld [vmem:[%s2667_s5 + $0xf8] sm:$0xff] }
 0x10d   : > { %1765 = vmatprep.subr.bf16.mxu0 %v1881_v41 }
 0x110   : > { %1767 = vmatpush3.bf16.msra.mxu0 %v1766_v46  ;;  %v1827_v46 = vpack.c.bf16 %v831_v43, %v827_v37 }
 0x111   : > { %1768 = vmatprep.subr.bf16.mxu0 %v1881_v41 }
 0x114   : > { %1770 = vmatpush3.bf16.msra.mxu0 %v1769_v49  ;;  %v833_v49 = vld [vmem:[%s2667_s5 + $0x108] sm:$0xff] }
 0x115   : > { %1771 = vmatprep.subr.bf16.mxu0 %v1881_v41 }
 0x118   : > { %1773 = vmatpush3.bf16.msra.mxu0 %v1772_v52  ;;  %v839_v52 = vld [vmem:[%s2667_s5 + $0x138] sm:$0xff] }
 0x119   : > { %1774 = vmatprep.subr.bf16.mxu0 %v1881_v41  ;;  %v1831_v59 = vpack.c.bf16 %v839_v52, %v835_v51  ;;  %v876_v51 = vsub.s32 2, %v2285_v31  ;;  %v864_v52 = vld [vmem:[%s2668_s6] sm:$0xf] }
 0x11b   : > { %v877_v56 = vrot.slane %v864_v52, %v876_v51 }
 0x11c   : > { %1776 = vmatpush3.bf16.msra.mxu0 %v1775_v55  ;;  %v1799_v55 = vpack.c.bf16 %v837_v50, %v833_v49  ;;  %v2544_v50 = vsub.s32 0, %v2285_v31 }
 0x11d   : > { %1777 = vmatprep.subr.bf16.mxu0 %v1881_v41 }
 0x120   : > { %1779 = vmatpush3.bf16.msra.mxu0 %v1778_v58  ;;  %v834_v58 = vld [vmem:[%s2667_s5 + $0x110] sm:$0xff] }
 0x121   : > { %1780 = vmatprep.subr.bf16.mxu0 %v1881_v41  ;;  %v1783_v41 = vpack.c.bf16 %v805_v0, %v801_v63  ;;  %v843_v63 = vld [vmem:[%s2667_s5 + $0x158] sm:$0xff] }
 0x122   : > { %v847_v0 = vld [vmem:[%s2667_s5 + $0x178] sm:$0xff] }
 0x123   : > { %1784 = vmatprep.subr.bf16.mxu1 %v1783_v41  ;;  %v1833_v41 = vpack.c.bf16 %v838_v60, %v834_v58 }
 0x124   : > { %1782 = vmatpush3.bf16.msra.mxu0 %v1781_v61  ;;  %1786 = vmatpush1.bf16.msra.mxu1 %v1785_v6  ;;  %v841_v61 = vld [vmem:[%s2667_s5 + $0x148] sm:$0xff]  ;;  %v1835_v6 = vpack.c.bf16 %v847_v0, %v843_v63 }
 0x125   : > { %1816 = vmatprep.subr.bf16.mxu0 %v1815_v5  ;;  %1788 = vmatprep.subr.bf16.mxu1 %v1787_v14  ;;  %v842_v5 = vld [vmem:[%s2667_s5 + $0x150] sm:$0xff]  ;;  %v1807_v14 = vpack.c.bf16 %v853_v9, %v849_v8 }
 0x126   : > { %v1837_v13 = vpack.c.bf16 %v846_v7, %v842_v5 }
 0x127   : > { %1645 = vmatmul.mubr.msk.f32.vlgmr.msra.gmra.mrb[4].mxu0 %vm700_vm2, %v701_v62  ;;  %v845_v62 = vld [vmem:[%s2667_s5 + $0x168] sm:$0xff] }
 0x128   : > { %1021 = vmatprep.mubr.f32.mxu0 %v1883_v21  ;;  %1818 = vmatpush1.bf16.msra.mxu0 %v1817_v10  ;;  %v817_v21 = vld [vmem:[%s2667_s5 + $0x88] sm:$0xff]  ;;  %v1803_v2 = vpack.c.bf16 %v845_v62, %v841_v61  ;;  %v851_v10 = vld [vmem:[%s2667_s5 + $0x198] sm:$0xff] }
 0x129   : > { %1820 = vmatprep.subr.bf16.mxu0 %v1819_v15  ;;  %v1791_v24 = vpack.c.bf16 %v821_v22, %v817_v21  ;;  %1790 = vmatpush1.bf16.msra.mxu1 %v1789_v19  ;;  %v1839_v15 = vpack.c.bf16 %v855_v11, %v851_v10  ;;  %v1809_v19 = vpack.c.bf16 %v852_v17, %v848_v16  ;;  %v857_v22 = vld [vmem:[%s2667_s5 + $0x1c8] sm:$0xff] }
 0x12a   : > { %v1841_v21 = vpack.c.bf16 %v854_v20, %v850_v18 }
 0x12b   : > { %1792 = vmatprep.subr.bf16.mxu1 %v1791_v24  ;;  %v859_v24 = vld [vmem:[%s2667_s5 + $0x1d8] sm:$0xff] }
 0x12c   : > { %1822 = vmatpush1.bf16.msra.mxu0 %v1821_v23  ;;  %v861_v23 = vld [vmem:[%s2667_s5 + $0x1e8] sm:$0xff] }
 0x12d   : > { %1824 = vmatprep.subr.bf16.mxu0 %v1823_v29  ;;  %1794 = vmatpush1.bf16.msra.mxu1 %v1793_v34  ;;  %v1811_v25 = vpack.c.bf16 %v861_v23, %v857_v22  ;;  %v1843_v29 = vpack.c.bf16 %v863_v27, %v859_v24  ;;  %v1813_v34 = vpack.c.bf16 %v860_v30, %v856_v28  ;;  %v2570_v27 = vand.u32 127, %v522_v26 }
 0x12e   : > { %1796 = vmatprep.subr.bf16.mxu1 %v1795_v42 }
 0x12f   : > { %vm1062_vm3 = vcmp.lt.s32.totalorder %v2570_v27, 16  ;;  %vm1079_vm4 = vcmp.lt.s32.totalorder %v2570_v27, 32  ;;  %vm1096_vm5 = vcmp.lt.s32.totalorder %v2570_v27, 64  ;;  %vm1187_vm6 = vcmp.lt.s32.totalorder %v2570_v27, 127 }
 0x130   : > { %1826 = vmatpush1.bf16.msra.mxu0 %v1825_v39  ;;  %vm1172_vm11 = vcmp.lt.s32.totalorder %v2570_v27, 1 }
 0x131   : > { %1828 = vmatprep.subr.bf16.mxu0 %v1827_v46  ;;  %1798 = vmatpush1.bf16.msra.mxu1 %v1797_v53  ;;  %v872_v53 = vsub.s32 1, %v2285_v31 }
 0x132   : > { %1800 = vmatprep.subr.bf16.mxu1 %v1799_v55  ;;  %v869_v55 = vrot.slane %v864_v52, %v2544_v50 }
 0x133   : > { %v873_v57 = vrot.slane %v864_v52, %v872_v53 }
 0x134   : > { %1830 = vmatpush1.bf16.msra.mxu0 %v1829_v54  ;;  %v880_v54 = vsub.s32 3, %v2285_v31 }
 0x135   : > { %1832 = vmatprep.subr.bf16.mxu0 %v1831_v59  ;;  %1802 = vmatpush1.bf16.msra.mxu1 %v1801_v1 }
 0x136   : > { %1804 = vmatprep.subr.bf16.mxu1 %v1803_v2  ;;  %v881_v58 = vrot.slane %v864_v52, %v880_v54 }
 0x138   : > { %1834 = vmatpush1.bf16.msra.mxu0 %v1833_v41 }
 0x139   : > { %1836 = vmatprep.subr.bf16.mxu0 %v1835_v6  ;;  %1806 = vmatpush1.bf16.msra.mxu1 %v1805_v12 }
 0x13a   : > { %1808 = vmatprep.subr.bf16.mxu1 %v1807_v14 }
 0x13c   : > { %1838 = vmatpush1.bf16.msra.mxu0 %v1837_v13 }
 0x13d   : > { %1840 = vmatprep.subr.bf16.mxu0 %v1839_v15  ;;  %1810 = vmatpush1.bf16.msra.mxu1 %v1809_v19 }
 0x13e   : > { %1812 = vmatprep.subr.bf16.mxu1 %v1811_v25 }
 0x140   : > { %1842 = vmatpush1.bf16.msra.mxu0 %v1841_v21 }
 0x141   : > { %1844 = vmatprep.subr.bf16.mxu0 %v1843_v29  ;;  %1814 = vmatpush1.bf16.msra.mxu1 %v1813_v34 }
 0x144   : > { %1846 = vmatpush1.bf16.msra.mxu0 %v1845_v35 }
 0x1d8   : > { %v696_v36 = vpop.f32.mrb[2].mxu1 }
 0x1d9   : > { %v1611_v37 = vpop.f32.mrb[3].mxu1 }
 0x1da   : > { %v626_v39 = vpop.f32.mrb[2].mxu0 }
 0x1db   : > { %v697_v42 = vadd.f32 %v696_v36, %v626_v39  ;;  %v1576_v43 = vpop.f32.mrb[3].mxu0 }
 0x1fa   : > { %v786_v44 = vpop.f32.mrb[4].mxu0 }
 0x1fb   : > { %v790_v46 = vadd.f32 %v786_v44, %v697_v42  ;;  %v1646_v47 = vpop.f32.mrb[5].mxu0 }
 0x1fd   : > { %v798_v48 = vadd.f32 %v1410_v45, %v790_v46 }
 0x1ff   : > { %v799_v49 = vmax.f32 %v798_v48, 0.0 }
 0x201   : > { %951 = vmatmul.mubr.f32.vlgmr.msra.gmra.mrb[4].mxu1 %v799_v49  ;;  %1022 = vmatmul.mubr.f32.vlgmr.msra.gmra.mrb[6].mxu0 %v799_v49 }
 0x2d4   : > { %v952_v59 = vpop.f32.mrb[4].mxu1  ;;  %v1023_v60 = vpop.f32.mrb[6].mxu0 }
 0x2d5   : > { %v2553_v61 = vadd.f32 %v952_v59, %v869_v55  ;;  %v2555_v62 = vadd.f32 %v1023_v60, %v877_v56  ;;  %v954_v63 = vpop.f32.mrb[5].mxu1  ;;  %v1025_v0 = vpop.f32.mrb[7].mxu0 }
 0x2d6   : > { %v2557_v1 = vadd.f32 %v954_v63, %v873_v57  ;;  %v2559_v41 = vadd.f32 %v1025_v0, %v881_v58 }
 0x2d7   : > { %v1028_v2 = vrot.slane %v2553_v61, 4  ;;  %v1040_v3 = vrot.slane %v2555_v62, 4 }
 0x2d8   : > { %v1034_v4 = vrot.slane %v2557_v1, 4  ;;  %v1046_v5 = vrot.slane %v2559_v41, 4 }
 0x2d9   : > { %v1029_v6 = vadd.f32 %v1028_v2, %v2553_v61  ;;  %v1041_v7 = vadd.f32 %v1040_v3, %v2555_v62 }
 0x2da   : > { %v1035_v8 = vadd.f32 %v1034_v4, %v2557_v1  ;;  %v1047_v9 = vadd.f32 %v1046_v5, %v2559_v41 }
 0x2db   : > { %v1030_v10 = vrot.slane %v1029_v6, 2  ;;  %v1042_v11 = vrot.slane %v1041_v7, 2 }
 0x2dc   : > { %v1036_v12 = vrot.slane %v1035_v8, 2  ;;  %v1048_v13 = vrot.slane %v1047_v9, 2 }
 0x2dd   : > { %v1031_v14 = vadd.f32 %v1030_v10, %v1029_v6  ;;  %v1043_v15 = vadd.f32 %v1042_v11, %v1041_v7 }
 0x2de   : > { %v1037_v16 = vadd.f32 %v1036_v12, %v1035_v8  ;;  %v1049_v17 = vadd.f32 %v1048_v13, %v1047_v9 }
 0x2df   : > { %v1032_v18 = vrot.slane %v1031_v14, 1  ;;  %v1044_v19 = vrot.slane %v1043_v15, 1 }
 0x2e0   : > { %v1038_v22 = vrot.slane %v1037_v16, 1  ;;  %v1050_v23 = vrot.slane %v1049_v17, 1 }
 0x2e1   : > { %v1033_v20 = vadd.f32 %v1032_v18, %v1031_v14  ;;  %v1045_v21 = vadd.f32 %v1044_v19, %v1043_v15  ;;  %v1115_v18 = vadd.s32 384, %v2570_v27  ;;  %v1120_v19 = vand.u32 15, %v2570_v27 }
 0x2e2   : > { %v1039_v24 = vadd.f32 %v1038_v22, %v1037_v16  ;;  %v1051_v25 = vadd.f32 %v1050_v23, %v1049_v17  ;;  %v1113_v16 = vadd.s32 128, %v2570_v27  ;;  %v1114_v17 = vadd.s32 256, %v2570_v27 }
 0x2e3   : > { %1052 = vrot.lane.b32.xlu0 %v1033_v20, %s1884_s20  ;;  %1056 = vrot.lane.b32.xlu1 %v1045_v21, %s1884_s20  ;;  %v1141_v22 = vand.u32 15, %v1115_v18  ;;  %vm2580_vm7 = vcmp.le.s32.totalorder %v1120_v19, 14  ;;  %vm2603_vm12 = vcmp.ge.s32.totalorder %v1120_v19, 1 }
 0x2e5   : > { %vm2592_vm10 = vcmp.le.s32.totalorder %v1141_v22, 14  ;;  %vm2623_vm15 = vcmp.ge.s32.totalorder %v1141_v22, 1 }
 0x2e7   : > { %1054 = vrot.lane.b32.xlu0 %v1039_v24, %s1884_s20  ;;  %1058 = vrot.lane.b32.xlu1 %v1051_v25, %s1884_s20 }
 0x355   : > { %v1053_v28 = vpop.permute.xlu0 %1052  ;;  %v1057_v29 = vpop.permute.xlu1 %1056 }
 0x359   : > { %v1055_v30 = vpop.permute.xlu0 %1054  ;;  %v1059_v32 = vpop.permute.xlu1 %1058 }
 0x35a   : > { %v1065_v33 = vsel %vm1062_vm3, %v1053_v28, %v1055_v30  ;;  %v1066_v34 = vsel %vm1062_vm3, %v1059_v32, %v1053_v28  ;;  %v1064_v37 = vsel %vm1062_vm3, %v1055_v30, %v1057_v29  ;;  %v1063_v39 = vsel %vm1062_vm3, %v1057_v29, %v1059_v32 }
 0x35b   : > { %v1068_v35 = vadd.f32 %v1065_v33, %v1039_v24  ;;  %v1067_v36 = vadd.f32 %v1066_v34, %v1033_v20  ;;  %v1069_v42 = vadd.f32 %v1064_v37, %v1045_v21  ;;  %v1070_v43 = vadd.f32 %v1063_v39, %v1051_v25  ;;  %v1194_v33 = vld [vmem:[%s2669_s7] sm:$0x77]  ;;  %v1195_v34 = vld [vmem:[%s2669_s7 + $0x8] sm:$0x77] }
 0x35c   : > { %v1127_v20 = vand.u32 15, %v1113_v16  ;;  %v1134_v21 = vand.u32 15, %v1114_v17  ;;  %v1871_v39 = vld [vmem:[%s2110_s11 + $0x8] sm:$0xff] }
 0x35d   : > { %1073 = vrot.lane.b32.xlu1 %v1068_v35, %s1885_s21  ;;  %1071 = vrot.lane.b32.xlu0 %v1067_v36, %s1885_s21 }
 0x35e   : > { %vm2584_vm8 = vcmp.le.s32.totalorder %v1127_v20, 14  ;;  %vm2588_vm9 = vcmp.le.s32.totalorder %v1134_v21, 14  ;;  %vm2607_vm13 = vcmp.ge.s32.totalorder %v1127_v20, 1  ;;  %vm2619_vm14 = vcmp.ge.s32.totalorder %v1134_v21, 1 }
 0x35f   : > { %v1265_v20 = vsub.s32 4, %v2285_v31 }
 0x361   : > { %1075 = vrot.lane.b32.xlu0 %v1069_v42, %s1885_s21  ;;  %1077 = vrot.lane.b32.xlu1 %v1070_v43, %s1885_s21 }
 0x3cf   : > { %v1072_v26 = vpop.permute.xlu0 %1071  ;;  %v1074_v44 = vpop.permute.xlu1 %1073 }
 0x3d0   : > { %v1082_v45 = vsel %vm1079_vm4, %v1072_v26, %v1074_v44 }
 0x3d1   : > { %v1085_v46 = vadd.f32 %v1082_v45, %v1068_v35 }
 0x3d3   : > { %v1076_v47 = vpop.permute.xlu0 %1075  ;;  %1090 = vrot.lane.b32.xlu1 %v1085_v46, %s1886_s22  ;;  %v1078_v48 = vpop.permute.xlu1 %1077 }
 0x3d4   : > { %v1080_v49 = vsel %vm1079_vm4, %v1076_v47, %v1078_v48  ;;  %v1083_v51 = vsel %vm1079_vm4, %v1078_v48, %v1072_v26  ;;  %v1081_v54 = vsel %vm1079_vm4, %v1074_v44, %v1076_v47 }
 0x3d5   : > { %v1084_v52 = vadd.f32 %v1083_v51, %v1067_v36  ;;  %v1087_v53 = vadd.f32 %v1080_v49, %v1070_v43  ;;  %v1086_v55 = vadd.f32 %v1081_v54, %v1069_v42 }
 0x3d7   : > { %1088 = vrot.lane.b32.xlu0 %v1084_v52, %s1886_s22  ;;  %1094 = vrot.lane.b32.xlu1 %v1087_v53, %s1886_s22 }
 0x3db   : > { %1092 = vrot.lane.b32.xlu0 %v1086_v55, %s1886_s22 }
 0x445   : > { %v1091_v56 = vpop.permute.xlu1 %1090 }
 0x449   : > { %v1089_v57 = vpop.permute.xlu0 %1088  ;;  %v1095_v58 = vpop.permute.xlu1 %1094 }
 0x44a   : > { %v1099_v59 = vsel %vm1096_vm5, %v1089_v57, %v1091_v56  ;;  %v1100_v60 = vsel %vm1096_vm5, %v1095_v58, %v1089_v57 }
 0x44b   : > { %v1102_v63 = vadd.f32 %v1099_v59, %v1085_v46  ;;  %v1101_v0 = vadd.f32 %v1100_v60, %v1084_v52 }
 0x44d   : > { %v1093_v2 = vpop.permute.xlu0 %1092  ;;  %v1106_v7 = vadd.f32 %v1102_v63, %v1101_v0 }
 0x44e   : > { %v1097_v3 = vsel %vm1096_vm5, %v1093_v2, %v1095_v58  ;;  %v1098_v4 = vsel %vm1096_vm5, %v1091_v56, %v1093_v2 }
 0x44f   : > { %v1103_v5 = vadd.f32 %v1098_v4, %v1086_v55  ;;  %v1104_v6 = vadd.f32 %v1097_v3, %v1087_v53 }
 0x451   : > { %v1105_v8 = vadd.f32 %v1104_v6, %v1101_v0  ;;  %v1107_v9 = vadd.f32 %v1103_v5, %v1102_v63  ;;  %v1108_v10 = vadd.f32 %v1104_v6, %v1103_v5 }
 0x453   : > { %v1110_v11 = vadd.f32 %v1108_v10, %v1106_v7  ;;  %v1109_v12 = vadd.f32 %v1107_v9, %v1105_v8 }
 0x455   : > { %v1112_v13 = vmul.f32 0.00390625, %v1110_v11  ;;  %v1111_v14 = vmul.f32 0.00390625, %v1109_v12 }
 0x457   : > { %1185 = vrot.lane.b32.xlu1 %v1112_v13, %s1887_s15  ;;  %1183 = vrot.lane.b32.xlu0 %v1111_v14, %s1887_s15  ;;  %v1208_v15 = vcombine.low %v1111_v14, %v1112_v13 }
 0x459   : > { %v1209_v29 = vrot.slane %v1208_v15, 7 }
 0x45b   : > { %1170 = vrot.lane.b32.xlu1 %v1112_v13, %s1888_s23  ;;  %1168 = vrot.lane.b32.xlu0 %v1111_v14, %s1888_s23  ;;  %v1211_v52 = vmul.f32 %v1209_v29, %v1194_v33  ;;  %v1212_v53 = vmul.f32 %v1209_v29, %v1195_v34 }
 0x45d   : > { %v1411_v27 = vrot.slane %v1211_v52, 9  ;;  %v1412_v7 = vrot.slane %v1212_v53, 9 }
 0x4c9   : > { %v1186_v30 = vpop.permute.xlu1 %1185  ;;  %v1184_v32 = vpop.permute.xlu0 %1183 }
 0x4ca   : > { %v1188_v35 = vsel %vm1187_vm6, %v1184_v32, %v1186_v30  ;;  %v1189_v36 = vsel %vm1187_vm6, %v1186_v30, %v1184_v32 }
 0x4cb   : > { %v1190_v42 = vsel %vm2580_vm7, %v1188_v35, 0.0  ;;  %v1191_v43 = vsel %vm2584_vm8, %v1189_v36, 0.0  ;;  %v1192_v26 = vsel %vm2588_vm9, %v1188_v35, 0.0  ;;  %v1193_v44 = vsel %vm2592_vm10, %v1189_v36, 0.0 }
 0x4cc   : > { %v1227_v45 = vcombine.low %v1190_v42, %v1191_v43  ;;  %v1228_v46 = vcombine.low %v1192_v26, %v1193_v44 }
 0x4cd   : > { %v1171_v49 = vpop.permute.xlu1 %1170  ;;  %v1169_v51 = vpop.permute.xlu0 %1168 }
 0x4ce   : > { %v1229_v54 = vrot.slane %v1227_v45, 6  ;;  %v1230_v55 = vrot.slane %v1228_v46, 6  ;;  %v1173_v56 = vsel %vm1172_vm11, %v1169_v51, %v1171_v49  ;;  %v1174_v57 = vsel %vm1172_vm11, %v1171_v49, %v1169_v51 }
 0x4cf   : > { %v1175_v58 = vsel %vm2603_vm12, %v1174_v57, 0.0  ;;  %v1176_v59 = vsel %vm2607_vm13, %v1173_v56, 0.0  ;;  %v1177_v60 = vsel %vm2619_vm14, %v1174_v57, 0.0  ;;  %v1178_v63 = vsel %vm2623_vm15, %v1173_v56, 0.0 }
 0x4d0   : > { %v1233_v0 = vmul.f32 %v1229_v54, %v1194_v33  ;;  %v1234_v2 = vmul.f32 %v1230_v55, %v1195_v34  ;;  %v1200_v3 = vcombine.low %v1175_v58, %v1176_v59  ;;  %v1201_v4 = vcombine.low %v1177_v60, %v1178_v63 }
 0x4d2   : > { %v1204_v5 = vmul.f32 %v1200_v3, %v1194_v33  ;;  %v1205_v6 = vmul.f32 %v1201_v4, %v1195_v34  ;;  %v1413_v8 = vrot.slane %v1233_v0, 10  ;;  %v1414_v9 = vrot.slane %v1234_v2, 10 }
 0x4d4   : > { %v1221_v10 = vadd.f32 %v1411_v27, %v1204_v5  ;;  %v1222_v11 = vadd.f32 %v1412_v7, %v1205_v6 }
 0x4d6   : > { %v1243_v12 = vadd.f32 %v1413_v8, %v1221_v10  ;;  %v1244_v13 = vadd.f32 %v1414_v9, %v1222_v11 }
 0x4d8   : > { %v1415_v14 = vmul.f32 -1.442695, %v1243_v12  ;;  %v1416_v15 = vmul.f32 -1.442695, %v1244_v13 }
 0x4da   : > { %1863 = vpow2.f32 %v1415_v14 }
 0x4db   : > { %1865 = vpow2.f32 %v1416_v15 }
 0x4e4   : > { %v1864_v16 = vpop.eup %1863 }
 0x4e5   : > { %v1866_v17 = vpop.eup %1865  ;;  %v1251_v18 = vadd.f32 1.0, %v1864_v16 }
 0x4e6   : > { %v1252_v19 = vadd.f32 1.0, %v1866_v17 }
 0x4e7   : > { %1867 = vrcp.f32 %v1251_v18 }
 0x4e8   : > { %1869 = vrcp.f32 %v1252_v19 }
 0x4f1   : > { %v1868_v21 = vpop.eup %1867 }
 0x4f2   : > { %v1870_v22 = vpop.eup %1869  ;;  %v1262_v23 = vrot.slane %v1868_v21, %v2544_v50  ;;  %v1266_v24 = vrot.slane %v1868_v21, %v1265_v20 }
 0x4f3   : > { %v1270_v25 = vrot.slane %v1870_v22, %v2544_v50  ;;  %v1274_v28 = vrot.slane %v1870_v22, %v1265_v20 }
 0x4f4   : > { %v1282_v29 = vrot.slane %v1262_v23, %v2544_v50  ;;  %v1286_v30 = vrot.slane %v1266_v24, %v2544_v50 }
 0x4f5   : > { %v1290_v32 = vrot.slane %v1270_v25, %v2544_v50  ;;  %v1294_v33 = vrot.slane %v1274_v28, %v2544_v50  ;;  %v1872_v50 = vld [vmem:[%s2110_s11 + $0x18] sm:$0xff] }
 0x4f6   : > { %v1295_v31 = vmul.f32 %v1282_v29, %v2553_v61  ;;  %v1296_v34 = vmul.f32 %v1286_v30, %v2557_v1 }
 0x4f7   : > { %v1297_v35 = vmul.f32 %v1290_v32, %v2555_v62  ;;  %v1298_v36 = vmul.f32 %v1294_v33, %v2559_v41 }
 0x4f8   : > { %v1299_v37 = vadd.f32 %v1295_v31, %v2169_v38  ;;  %v1300_v42 = vadd.f32 %v1871_v39, %v1296_v34 }
 0x4f9   : > { %v1301_v43 = vadd.f32 %v1297_v35, %v2172_v40  ;;  %v1302_v26 = vadd.f32 %v1872_v50, %v1298_v36 }
 0x4fa   : > { %v1303_v61 = vmax.f32 %v1299_v37, 0.0  ;;  %v1304_v44 = vmax.f32 %v1300_v42, 0.0 }
 0x4fb   : > { %v1305_v1 = vmax.f32 %v1301_v43, 0.0  ;;  %v1306_v45 = vmax.f32 %v1302_v26, 0.0 }
 0x4fc   : > { %1307 = vst [vmem:[%s305_s10] sm:$0xff] %v1303_v61  ;;  %1308 = vst [vmem:[%s305_s10 + $0x8] sm:$0xff] %v1304_v44 }
 0x4fd   : > { %1309 = vst [vmem:[%s305_s10 + $0x10] sm:$0xff] %v1305_v1  ;;  %1310 = vst [vmem:[%s305_s10 + $0x18] sm:$0xff] %v1306_v45 }
 0x4fe PF: > { %s18_s27 = sadd.s32 1, %s1879_s27  }
 0x4ff   : > { %p15_p4 = scmp.ge.s32.totalorder %s18_s27, 4  }
 0x501   :  { %17 = sbr.rel (!%p15_p4) target bundleno = 1 (0x1), region = 84 }

</bundles_post_ra>
